<compile_context>
chip_gen: v5e
topology: v5e:2x2
jax: 0.10.0
libtpu: 0.0.40
codegen_flags: <defaults>
</compile_context>

<pallas_src>
import math
from functools import partial

import jax
import jax.numpy as jnp
from jax.experimental import pallas as pl
from jax.experimental.pallas import tpu as pltpu


# ---------------------------------------------------------------------------
# helpers
# ---------------------------------------------------------------------------
def _round_up(x, m):
    return ((x + m - 1) // m) * m


def _pad_to(a, shape):
    pads = [(0, t - s) for s, t in zip(a.shape, shape)]
    if any(p[1] for p in pads):
        return jnp.pad(a, pads)
    return a


def _vmem_limit_bytes():
    """Scoped-VMEM limit per generation (v5e default is only 16 MiB)."""
    cap = 128 * 1024 * 1024
    try:
        info = pltpu.get_tpu_info()
        cap = int(getattr(info, "vmem_capacity_bytes", cap) or cap)
    except Exception:
        pass
    return int(min(max(cap // 2, 16 * 1024 * 1024), 64 * 1024 * 1024))


def _choose_row_tile(total, max_tile, min_steps=2):
    """Row tile that is a multiple of 8 (sublane), <= max_tile, and leaves
    >= min_steps grid steps when possible (so v7x's two TensorCores both get
    work and the pipeline can overlap).  Never returns an oversized single
    block; awkward sizes are handled by zero-padding the row count.
    Returns (tile, padded_total)."""
    max_tile = max(8, (max_tile // 8) * 8)
    divisors = [d for d in range(8, min(total, max_tile) + 1, 8) if total % d == 0]
    good = [d for d in divisors if total // d >= min_steps]
    if good:
        return max(good), total
    if divisors:
        return max(divisors), total
    if total <= max_tile:
        # small awkward total: one full-array block (8-alignment waived for full dims)
        return total, total
    # large awkward total: pad rows up to a multiple of an aligned tile
    return max_tile, _round_up(total, max_tile)


# ---------------------------------------------------------------------------
# Kernel 1: 1x1-conv stem + ReLU + adaptive average pool (spatial-chunked)
# ---------------------------------------------------------------------------
def _stem_pool_kernel(x_ref, w_ref, o_ref, acc_ref, *, inv_hw):
    # x_ref: (TB, C, THW)  w_ref: (Fp, C)  o_ref: (TB, Fp) bf16
    # acc_ref: (TB, Fp) f32 running spatial sum (persists across the k axis)
    k = pl.program_id(1)

    @pl.when(k == 0)
    def _init():
        acc_ref[...] = jnp.zeros_like(acc_ref)

    x = x_ref[...]                                   # (TB, C, THW), HW chunk on lanes
    wt = w_ref[...]                                  # (Fp, C)
    wt_b = jnp.broadcast_to(wt[None, :, :], (x.shape[0],) + wt.shape)
    # Canonical batched matmul: per instance  W^T(Fp,C) @ x(C,THW) -> (Fp,THW).
    # LHS has K=C on lanes, RHS has K=C on sublanes / THW on lanes: no operand
    # transposes, and only Fp (not THW) MXU row pushes per instance.
    feat = jnp.einsum("bfc,bct->bft", wt_b, x,
                      preferred_element_type=jnp.float32)     # (TB, Fp, THW) f32
    feat = jnp.maximum(feat, 0.0)                             # ReLU
    acc_ref[...] += jnp.sum(feat, axis=-1)                    # lane-reduce the chunk

    @pl.when(k == pl.num_programs(1) - 1)
    def _finalize():
        # adaptive average pool over the (true) spatial extent; bf16 writeback
        o_ref[...] = (acc_ref[...] * inv_hw).astype(o_ref.dtype)


def stem_and_pool(x_flat, w_t, *, out_dtype=jnp.bfloat16):
    """x_flat: (B*N, C, H*W);  w_t: (Fp, C)  ->  (B*N, Fp) bf16 features."""
    BN, C, HW = x_flat.shape
    Fp = w_t.shape[0]

    # Spatial chunking: 128-lane chunks (or the full extent if HW < 128); pad
    # HW with zeros -> padded positions contribute relu(W*0)=0 to the sum.
    if HW <= 128:
        thw, hw_pad = HW, HW
    else:
        thw = 128
        hw_pad = _round_up(HW, 128)
    if hw_pad != HW:
        x_flat = jnp.pad(x_flat, ((0, 0), (0, 0), (0, hw_pad - HW)))

    # Row tile: bound the live (TB, Fp, THW) f32 matmul result by a VMEM/vreg
    # budget and keep >=2 grid steps on the parallel axis when possible.
    interm_budget = 2 * 1024 * 1024
    max_tb = max(8, min(64, (interm_budget // (thw * Fp * 4)) // 8 * 8))
    tb, bn_pad = _choose_row_tile(BN, max_tb, min_steps=2)
    if bn_pad != BN:
        x_flat = jnp.pad(x_flat, ((0, bn_pad - BN), (0, 0), (0, 0)))

    kernel = partial(_stem_pool_kernel, inv_hw=1.0 / HW)
    out = pl.pallas_call(
        kernel,
        out_shape=jax.ShapeDtypeStruct((bn_pad, Fp), out_dtype),
        grid_spec=pltpu.PrefetchScalarGridSpec(
            num_scalar_prefetch=0,
            grid=(bn_pad // tb, hw_pad // thw),      # (instances, spatial chunks)
            in_specs=[
                # NOTE: on v5e, if profiling shows exposed input DMA, add
                # pipeline_mode=pl.Buffered(3) to this BlockSpec.
                pl.BlockSpec((tb, C, thw), lambda i, k: (i, 0, k)),
                pl.BlockSpec((Fp, C), lambda i, k: (0, 0)),
            ],
            out_specs=pl.BlockSpec((tb, Fp), lambda i, k: (i, 0)),
            scratch_shapes=[pltpu.VMEM((tb, Fp), jnp.float32)],
        ),
        compiler_params=pltpu.CompilerParams(
            dimension_semantics=("parallel", "arbitrary"),
            vmem_limit_bytes=_vmem_limit_bytes(),
        ),
    )(x_flat, w_t)
    return out[:BN] if bn_pad != BN else out


# ---------------------------------------------------------------------------
# Kernel 2: gated MIL attention pooling + concat(max pool) + linear head
# ---------------------------------------------------------------------------
def _attn_head_kernel(feats_ref, vu_ref, wvec_ref, wha_ref, whm_ref, b_ref,
                      o_ref, *, gated, hidden):
    feats = feats_ref[...]                           # (TB, N, Fp) bf16
    tb, n, f = feats.shape
    fl = feats.reshape(tb * n, f)                    # flatten bags: one MXU matmul

    # Fused V/U projection: single (TB*N, Fp) @ (Fp, [2*]H) matmul fills the
    # 256-wide MXU on v6e/v7x when gated; bf16 operands, f32 accumulation.
    proj = jnp.dot(fl, vu_ref[...], preferred_element_type=jnp.float32)
    if gated:
        a = jnp.tanh(proj[:, :hidden]) * jax.nn.sigmoid(proj[:, hidden:])
    else:
        a = jnp.tanh(proj)
    a3 = a.reshape(tb, n, hidden)                    # (TB, N, H)

    # Attention scores: VPU multiply + lane reduction (no 1-column MXU matmul);
    # the 1/sqrt(hidden) scale is pre-folded into wvec.
    s = jnp.sum(a3 * wvec_ref[...], axis=-1, keepdims=True)          # (TB, N, 1)
    s = s - jnp.max(s, axis=1, keepdims=True)        # stable softmax over instances
    e = jnp.exp(s)
    attn = e * pl.reciprocal(jnp.sum(e, axis=1, keepdims=True), approx=True)

    feats_f32 = feats.astype(jnp.float32)
    pooled = jnp.sum(attn * feats_f32, axis=1)       # (TB, Fp) attention pool
    maxed = jnp.max(feats_f32, axis=1)               # (TB, Fp) max pool

    # head Linear(2F, n): concat realized as split-weight matmuls (bf16 in MXU)
    o_ref[...] = (jnp.dot(pooled.astype(jnp.bfloat16), wha_ref[...],
                          preferred_element_type=jnp.float32)
                  + jnp.dot(maxed.astype(jnp.bfloat16), whm_ref[...],
                            preferred_element_type=jnp.float32)
                  + b_ref[...])


def attention_head(feats, vu, wvec, wha, whm, b_head, *, gated, hidden):
    """feats: (B, N, Fp) bf16 -> (B, n_pad) f32 logits (padded lane width)."""
    B, N, Fp = feats.shape
    n_pad = wha.shape[1]
    tb, b_pad = _choose_row_tile(B, 64, min_steps=2)
    if b_pad != B:
        feats = jnp.pad(feats, ((0, b_pad - B), (0, 0), (0, 0)))

    kernel = partial(_attn_head_kernel, gated=gated, hidden=hidden)
    out = pl.pallas_call(
        kernel,
        out_shape=jax.ShapeDtypeStruct((b_pad, n_pad), jnp.float32),
        grid_spec=pltpu.PrefetchScalarGridSpec(
            num_scalar_prefetch=0,
            grid=(b_pad // tb,),
            in_specs=[
                pl.BlockSpec((tb, N, Fp), lambda i: (i, 0, 0)),
                pl.BlockSpec(vu.shape, lambda i: (0, 0)),
                pl.BlockSpec(wvec.shape, lambda i: (0, 0)),
                pl.BlockSpec(wha.shape, lambda i: (0, 0)),
                pl.BlockSpec(whm.shape, lambda i: (0, 0)),
                pl.BlockSpec(b_head.shape, lambda i: (0, 0)),
            ],
            out_specs=pl.BlockSpec((tb, n_pad), lambda i: (i, 0)),
        ),
        compiler_params=pltpu.CompilerParams(
            dimension_semantics=("parallel",),
            vmem_limit_bytes=_vmem_limit_bytes(),
        ),
    )(feats, vu, wvec, wha, whm, b_head)
    return out[:B] if b_pad != B else out


# ---------------------------------------------------------------------------
# One-time parameter preparation (padding, scale fold, weight split, dtypes)
# ---------------------------------------------------------------------------
def prepare_params(params, *, gated=False, scale_op=True, mm_dtype=jnp.bfloat16):
    w_stem = params['w_stem']                        # (C, F)
    C, F = w_stem.shape
    Fp = _round_up(F, 128)
    hidden = params['attn_v'].shape[1]
    Hp = _round_up(hidden, 128)
    n_out = params['head_w'].shape[1]
    n_pad = _round_up(n_out, 128)

    w_t = _pad_to(w_stem.T, (Fp, C))                 # (Fp, C) stem weight, pre-transposed
    v = _pad_to(params['attn_v'], (Fp, Hp))
    if gated:
        u = _pad_to(params['attn_u'], (Fp, Hp))
        vu = jnp.concatenate([v, u], axis=1)         # fused (Fp, 2*Hp) projection
    else:
        vu = v                                       # u dropped entirely when not gated
    scale = (1.0 / math.sqrt(hidden)) if scale_op else 1.0
    wvec = _pad_to((params['attn_w'] * scale).reshape(1, hidden),
                   (1, Hp)).astype(jnp.float32)

    wha = _pad_to(params['head_w'][:F], (Fp, n_pad)).astype(mm_dtype)   # attention-pool half
    whm = _pad_to(params['head_w'][F:], (Fp, n_pad)).astype(mm_dtype)   # max-pool half
    b = _pad_to(params['head_b'].reshape(1, -1), (1, n_pad)).astype(jnp.float32)

    return {
        'w_t': w_t, 'vu': vu.astype(mm_dtype), 'wvec': wvec,
        'wha': wha, 'whm': whm, 'b': b,
        'Fp': Fp, 'Hp': Hp, 'n_out': n_out, 'gated': gated,
    }


# ---------------------------------------------------------------------------
# Full model wrapper
# ---------------------------------------------------------------------------
def binning_attention_model(x, prepared):
    """x: (B, N, C, H, W)  ->  (B, n) f32 logits."""
    B, N, C, H, W = x.shape
    # (B, N, C, H, W) -> (B*N, C, H*W): pure reshape, HW stays on the lane dim.
    x_flat = x.reshape(B * N, C, H * W)
    w_t = prepared['w_t'].astype(x_flat.dtype)       # tiny (Fp, C) cast

    feats = stem_and_pool(x_flat, w_t)               # (B*N, Fp) bf16
    feats = feats.reshape(B, N, prepared['Fp'])

    logits = attention_head(feats, prepared['vu'], prepared['wvec'],
                            prepared['wha'], prepared['whm'], prepared['b'],
                            gated=prepared['gated'], hidden=prepared['Hp'])
    return logits[:, :prepared['n_out']]


def init_params(key, *, C, F, hidden, n_out):
    ks = jax.random.split(key, 6)
    s = lambda fan_in: 1.0 / math.sqrt(fan_in)
    return {
        'w_stem': jax.random.normal(ks[0], (C, F), jnp.float32) * s(C),
        'attn_v': jax.random.normal(ks[1], (F, hidden), jnp.float32) * s(F),
        'attn_u': jax.random.normal(ks[2], (F, hidden), jnp.float32) * s(F),
        'attn_w': jax.random.normal(ks[3], (hidden, 1), jnp.float32) * s(hidden),
        'head_w': jax.random.normal(ks[4], (2 * F, n_out), jnp.float32) * s(2 * F),
        'head_b': jax.random.normal(ks[5], (1, n_out), jnp.float32) * 0.01,
    }


if __name__ == "__main__":
    # Small shapes consistent with the forward: (B, N, C, H, W)
    B, N, C, H, W = 2, 8, 4, 16, 16
    F, hidden, n_out = 128, 128, 5

    key = jax.random.PRNGKey(0)
    kx, kp = jax.random.split(key)
    x = jax.random.normal(kx, (B, N, C, H, W), jnp.float32)
    params = init_params(kp, C=C, F=F, hidden=hidden, n_out=n_out)
    prepared = prepare_params(params, gated=True, scale_op=True)

    pred = binning_attention_model(x, prepared)
    pred = jax.block_until_ready(pred)
    assert pred.shape == (B, n_out), pred.shape
    assert bool(jnp.all(jnp.isfinite(pred)))
    print("KERNEL_OK")
</pallas_src>

<mosaic_0001>
module attributes {stable_mosaic.version = 11 : i64} {
  func.func @_stem_pool_kernel(%arg0: i32, %arg1: i32, %arg2: memref<8x4x128xf32, #tpu.memory_space<vmem>>, %arg3: memref<128x4xf32, #tpu.memory_space<vmem>>, %arg4: memref<8x128xbf16, #tpu.memory_space<vmem>>, %arg5: memref<8x128xf32, #tpu.memory_space<vmem>>) attributes {dimension_semantics = [#tpu.dimension_semantics<parallel>, #tpu.dimension_semantics<arbitrary>], iteration_bounds = array<i64: 2, 2>, scalar_prefetch = 0 : i64, scratch_operands = 1 : i64, tpu.core_type = #tpu.core_type<tc>, window_params = [{transform_indices = @transform_0, window_bounds = array<i64: 8, 4, 128>}, {pipeline_mode = #tpu.pipeline_mode<synchronous>, transform_indices = @transform_1, window_bounds = array<i64: 128, 4>}, {transform_indices = @transform_2, window_bounds = array<i64: 8, 128>}]} {
    %c0_i32 = arith.constant 0 : i32
    %0 = arith.cmpi eq, %arg1, %c0_i32 : i32
    %1 = arith.extui %0 : i1 to i32
    %c0_i32_0 = arith.constant 0 : i32
    %2 = arith.cmpi ne, %1, %c0_i32_0 : i32
    scf.if %2 {
      %cst_12 = arith.constant 0.000000e+00 : f32
      %18 = vector.broadcast %cst_12 : f32 to vector<8x128xf32>
      %c0_13 = arith.constant 0 : index
      %c0_14 = arith.constant 0 : index
      %19 = vector.load %arg5[%c0_13, %c0_14] : memref<8x128xf32, #tpu.memory_space<vmem>>, vector<8x128xf32>
      tpu.vector_store %arg5[%c0_13, %c0_14], %18 {strides = array<i32>} : memref<8x128xf32, #tpu.memory_space<vmem>>, vector<8x128xf32>,
    } else {
    }
    %c0 = arith.constant 0 : index
    %c0_1 = arith.constant 0 : index
    %c0_2 = arith.constant 0 : index
    %3 = vector.load %arg2[%c0, %c0_1, %c0_2] : memref<8x4x128xf32, #tpu.memory_space<vmem>>, vector<8x4x128xf32>
    %c0_3 = arith.constant 0 : index
    %c0_4 = arith.constant 0 : index
    %4 = vector.load %arg3[%c0_3, %c0_4] : memref<128x4xf32, #tpu.memory_space<vmem>>, vector<128x4xf32>
    %5 = vector.shape_cast %4 : vector<128x4xf32> to vector<1x128x4xf32>
    %6 = vector.shape_cast %5 : vector<1x128x4xf32> to vector<1x128x4xf32>
    %7 = vector.broadcast %6 : vector<1x128x4xf32> to vector<8x128x4xf32>
    "tpu.trace_start"() <{level = 10 : i32, message = "bfc,bct->bft"}> : () -> ()
    %cst = arith.constant dense<0.000000e+00> : vector<8x128x128xf32>
    %8 = tpu.matmul %7, %3, %cst {dimension_numbers = #tpu.dot_dimension_numbers<[2], [1], [1], [2], [0, 0, 0, 1, 1, 2], [0], [0]>} : vector<8x128x4xf32>, vector<8x4x128xf32>, vector<8x128x128xf32> -> vector<8x128x128xf32>
    "tpu.trace_stop"() : () -> ()
    %cst_5 = arith.constant 0.000000e+00 : f32
    %9 = vector.broadcast %cst_5 : f32 to vector<8x128x128xf32>
    %10 = arith.maximumf %8, %9 : vector<8x128x128xf32>
    %c0_6 = arith.constant 0 : index
    %c0_7 = arith.constant 0 : index
    %11 = vector.load %arg5[%c0_6, %c0_7] : memref<8x128xf32, #tpu.memory_space<vmem>>, vector<8x128xf32>
    %cst_8 = arith.constant dense<0.000000e+00> : vector<8x128xf32>
    %12 = vector.multi_reduction <add>, %10, %cst_8 [2] : vector<8x128x128xf32> to vector<8x128xf32>
    %13 = arith.addf %11, %12 : vector<8x128xf32>
    %c0_9 = arith.constant 0 : index
    %c0_10 = arith.constant 0 : index
    %14 = vector.load %arg5[%c0_9, %c0_10] : memref<8x128xf32, #tpu.memory_space<vmem>>, vector<8x128xf32>
    tpu.vector_store %arg5[%c0_9, %c0_10], %13 {strides = array<i32>} : memref<8x128xf32, #tpu.memory_space<vmem>>, vector<8x128xf32>,
    %c1_i32 = arith.constant 1 : i32
    %15 = arith.cmpi eq, %arg1, %c1_i32 : i32
    %16 = arith.extui %15 : i1 to i32
    %c0_i32_11 = arith.constant 0 : i32
    %17 = arith.cmpi ne, %16, %c0_i32_11 : i32
    scf.if %17 {
      %c0_12 = arith.constant 0 : index
      %c0_13 = arith.constant 0 : index
      %18 = vector.load %arg5[%c0_12, %c0_13] : memref<8x128xf32, #tpu.memory_space<vmem>>, vector<8x128xf32>
      %cst_14 = arith.constant 3.906250e-03 : f32
      %19 = vector.broadcast %cst_14 : f32 to vector<8x128xf32>
      %20 = arith.mulf %18, %19 : vector<8x128xf32>
      %21 = arith.truncf %20 : vector<8x128xf32> to vector<8x128xbf16>
      %c0_15 = arith.constant 0 : index
      %c0_16 = arith.constant 0 : index
      %22 = vector.load %arg4[%c0_15, %c0_16] : memref<8x128xbf16, #tpu.memory_space<vmem>>, vector<8x128xbf16>
      tpu.vector_store %arg4[%c0_15, %c0_16], %21 {strides = array<i32>} : memref<8x128xbf16, #tpu.memory_space<vmem>>, vector<8x128xbf16>,
    } else {
    }
    return
  }
  func.func @transform_0(%arg0: i32, %arg1: i32) -> (i32, i32, i32) {
    %c0_i32 = arith.constant 0 : i32
    %c0_i32_0 = arith.constant 0 : i32
    return %arg0, %c0_i32, %arg1 : i32, i32, i32
  }
  func.func @transform_1(%arg0: i32, %arg1: i32) -> (i32, i32) {
    %c0_i32 = arith.constant 0 : i32
    %c0_i32_0 = arith.constant 0 : i32
    %c0_i32_1 = arith.constant 0 : i32
    return %c0_i32, %c0_i32_0 : i32, i32
  }
  func.func @transform_2(%arg0: i32, %arg1: i32) -> (i32, i32) {
    %c0_i32 = arith.constant 0 : i32
    %c0_i32_0 = arith.constant 0 : i32
    return %arg0, %c0_i32 : i32, i32
  }
}

</mosaic_0001>

<bundles_post_ra>
// kernel: tpu_custom_call.1
= control target key start
LH: loop header
LB: loop body
LE: loop exit
PB: predicated region body
PF: predicated region fallthrough
CT: control target
= control target key end

     0   :  { %7 = vsyncpa [#allocation5], 0  ;;  %s2960_s0 = inlined_call_operand.vmem [shape: f32[16,4,256], index: 0, kind: input, shape index: {}]   ;;  %s2961_s1 = inlined_call_operand.vmem [shape: f32[128,4], index: 1, kind: input, shape index: {}]   ;;  %s2962_s2 = inlined_call_operand.hbm [shape: bf16[16,128], index: 2, kind: output, shape index: {}]  }
   0x1   :  { %9 = vsyncpa [#allocation5 + $0x1], 0  ;;  %s2136_s9 = smov 0   ;;  %s2138_s10 = smov 0  }
   0x2   :  { %s2140_s11 = smov 0   ;;  %s2142_s12 = smov 0  }
   0x3   :  { %s2144_s13 = smov 0   ;;  %s2146_s14 = smov 0  }
   0x4   :  { %s2148_s15 = smov 0   ;;  %s2150_s16 = smov 0  }
   0x5   :  { %s2152_s17 = smov 0   ;;  %s2154_s18 = smov 0  }
   0x6 LB: > { %s1766_s19 = sadd.s32 4294967295, %s2118_s18   ;;  %s1767_s20 = sadd.s32 4294967294, %s2118_s18   ;;  %s2118_s18 = sphi %s2154_s18, %s15_s18   ;;  %s2114_s17 = sphi %s2152_s17, %s2984_s17   ;;  %s2110_s16 = sphi %s2150_s16, %s2983_s16   ;;  %s2106_s15 = sphi %s2148_s15, %s2982_s15   ;;  %s2102_s14 = sphi %s2146_s14, %s2981_s14   ;;  %s2098_s13 = sphi %s2144_s13, %s2980_s13   ;;  %s2094_s12 = sphi %s2142_s12, %s2979_s12   ;;  %s2090_s11 = sphi %s2140_s11, %s2978_s11   ;;  %s2086_s10 = sphi %s2138_s10, %s2977_s10   ;;  %s2082_s9 = sphi %s2136_s9, %s2976_s9  }
   0x7   : > { %s24_s21 = sadd.s32 1, %s2110_s16  ;;  %s27_s22 = sadd.s32 1, %s2114_s17 }
   0x8   : > { %p25_p0 = scmp.ge.s32.totalorder %s24_s21, 2  ;;  %s36_s23 = sadd.s32 1, %s2098_s13 }
   0x9   : > { %p43_p1 = scmp.ne.s32.totalorder %s2098_s13, %s2094_s12  ;;  %p44_p2 = scmp.eq.s32.totalorder %s2118_s18, 0 }
   0xa   : > { %s2986_s21 = smov (%p25_p0, %s24_s21), 0  ;;  %s2988_s22 = smov (!%p25_p0, %s27_s22), %s2114_s17 }
   0xb   : > { %s32_s24 = ssub.s32 %s2110_s16, %s2986_s21  ;;  %p2199_p3 = por %p44_p2, %p43_p1 }
   0xc   : > { %p29_p4 = scmp.ge.s32.totalorder %s2988_s22, 2  ;;  %s83_s26 = sadd.s32 1, %s2090_s11 }
   0xd   : > { %p93_p5 = scmp.ne.s32.totalorder %s2090_s11, %s2086_s10  ;;  %p94_p6 = scmp.eq.s32.totalorder %s1766_s19, 3 }
   0xe   : > { %s2990_s22 = smov (%p29_p4, %s2988_s22), 0  ;;  %p99_p8 = scmp.ne.s32.totalorder %s2086_s10, %s2082_s9 }
   0xf   : > { %p2208_p7 = por %p94_p6, %p93_p5  ;;  %s31_s28 = ssub.s32 %s2114_s17, %s2990_s22 }
  0x10   : > { %p100_p9 = scmp.eq.s32.totalorder %s1767_s20, 3  ;;  %s33_s29 = sor.u32 %s32_s24, %s31_s28 }
  0x11   : > { %p81_p10 = scmp.eq.s32.totalorder %s31_s28, 0  ;;  %p34_p11 = scmp.eq.s32.totalorder %s33_s29, 0 }
  0x12   : > { %p2216_p12 = por %p100_p9, %p99_p8  ;;  %p1769_p13 = scmp.ge.s32.totalorder %s2118_s18, 4 }
  0x13   : > { %s2221_s3 = scalar_select %p81_p10, %s2090_s11, %s83_s26  }
  0x14   : > { %s2224_s4 = scalar_select %p34_p11, %s2098_s13, %s36_s23  }
  0x15   : > { %119 = sbr.rel (%p1769_p13) target bundleno = 40 (0x28), region = 20 }
  0x1a   : > { %122 = sbr.rel (!%p2199_p3) target bundleno = 40 (0x28), region = 24  ;;  %s124_s5 = sand.u32 (%p2199_p3), 1, %s2098_s13  }
  0x1b   : > { %s1919_s6 = sshll.u32 (%p2199_p3), %s2114_s17, 4  ;;  %s1770_s7 = sshll.u32 (%p2199_p3), %s124_s5, 5 }
  0x1c   : > { %s129_s8 = sadd.s32 (%p2199_p3), %s2110_s16, %s1919_s6  ;;  %s126_s23 = scalar_lea.vmem (%p2199_p3), [#allocation3], %s1770_s7 }
  0x1d   : > { %s1773_s19 = sshll.u32 (%p2199_p3), %s129_s8, 2 }
  0x1e   : > { %s131_s26 = scalar_lea.vmem (%p2199_p3), %s2960_s0, %s1773_s19 }
  0x1f   : > { %v148_v0 = vld [vmem:[%s131_s26] sm:$0xf]  ;;  %v150_v1 = vld [vmem:[%s131_s26 + $0x8] sm:$0xf]  ;;  %v152_v2 = vld [vmem:[%s131_s26 + $0x10] sm:$0xf] }
  0x20   : > { %149 = vst [vmem:[%s126_s23] sm:$0xf] %v148_v0  ;;  %v154_v3 = vld [vmem:[%s131_s26 + $0x18] sm:$0xf]  ;;  %v156_v4 = vld [vmem:[%s131_s26 + $0x20] sm:$0xf] }
  0x21   : > { %151 = vst [vmem:[%s126_s23 + $0x4] sm:$0xf] %v150_v1  ;;  %v158_v5 = vld [vmem:[%s131_s26 + $0x28] sm:$0xf]  ;;  %v160_v6 = vld [vmem:[%s131_s26 + $0x30] sm:$0xf] }
  0x22   : > { %153 = vst [vmem:[%s126_s23 + $0x8] sm:$0xf] %v152_v2  ;;  %v162_v7 = vld [vmem:[%s131_s26 + $0x38] sm:$0xf] }
  0x23   : > { %155 = vst [vmem:[%s126_s23 + $0xc] sm:$0xf] %v154_v3 }
  0x24   : > { %157 = vst [vmem:[%s126_s23 + $0x10] sm:$0xf] %v156_v4 }
  0x25   : > { %159 = vst [vmem:[%s126_s23 + $0x14] sm:$0xf] %v158_v5 }
  0x26   : > { %161 = vst [vmem:[%s126_s23 + $0x18] sm:$0xf] %v160_v6 }
  0x27   : > { %163 = vst [vmem:[%s126_s23 + $0x1c] sm:$0xf] %v162_v7 }
  0x28 PF: > { %p1774_p0 = scmp.ge.s32.totalorder %s2118_s18, 1  ;;  %p202_p1 = scmp.lt.s32.totalorder %s2118_s18, 5 }
  0x2a   : > { %p203_p2 = pnand %p1774_p0, %p202_p1 }
  0x2b   : > { %s209_s25 = sand.u32 (!%p203_p2), 1, %s2094_s12   ;;  %s227_s28 = sand.u32 (!%p203_p2), 1, %s2086_s10  }
  0x2c   : > { %206 = sbr.rel (%p203_p2) target bundleno = 679 (0x2a7), region = 65  ;;  %s1775_s29 = sshll.u32 (!%p203_p2), %s209_s25, 5 }
  0x2d   : > { %s2241_s5 = sshll.u32 (!%p203_p2), %s227_s28, 2  ;;  %s211_s6 = scalar_lea.vmem (!%p203_p2), [#allocation3], %s1775_s29 }
  0x2e   : > { %s229_s7 = scalar_lea.vmem (!%p203_p2), [#allocation4], %s2241_s5  ;;  %p1777_p3 = scmp.ne.s32.totalorder (!%p203_p2), %s2102_s14, 0 }
  0x31   : > { %234 = sbr.rel (%p1777_p3) target bundleno = 56 (0x38), region = 73 }
  0x36   : > { %v2120_v8 = vmov 0.0  }
  0x37   : > { %235 = vst [vmem:[#allocation2] sm:$0xff] %v2120_v8 }
  0x38 PF: > { %v236_v9 = vld [vmem:[%s211_s6] sm:$0xf]  ;;  %vm309_vm0 = vcmask 1043456   ;;  %v238_v10 = vld [vmem:[%s211_s6 + $0x8] sm:$0xf]  ;;  %v2248_v11 = vld [vmem:[%s2961_s1] sm:$0xff] }
  0x39   : > { %1778 = vmatpush.msk.msra.mxu0 %vm309_vm0, %v236_v9  ;;  %1812 = vmatpush.msk.msra.mxu2 %vm309_vm0, %v238_v10  ;;  %v239_v12 = vld [vmem:[%s211_s6 + $0xc] sm:$0xf]  ;;  %vm260_vm1 = vcmask 31744   ;;  %v237_v13 = vld [vmem:[%s211_s6 + $0x4] sm:$0xf]  ;;  %v2295_v20 = vld [vmem:[%s2961_s1 + $0x18] sm:$0xff] }
  0x3a   : > { %1829 = vmatpush.msk.msra.mxu3 %vm309_vm0, %v239_v12  ;;  %1779 = vmatmul.msk.f32.vlgmr.msra.gmra.mxu0 %vm260_vm1, %v2248_v11  ;;  %v242_v14 = vld [vmem:[%s211_s6 + $0x18] sm:$0xf]  ;;  %v240_v15 = vld [vmem:[%s211_s6 + $0x10] sm:$0xf]  ;;  %v243_v16 = vld [vmem:[%s211_s6 + $0x1c] sm:$0xf] }
  0x3b   : > { %1813 = vmatmul.msk.f32.vlgmr.msra.gmra.mxu2 %vm260_vm1, %v2248_v11  ;;  %1830 = vmatmul.msk.f32.vlgmr.msra.gmra.mxu3 %vm260_vm1, %v2248_v11  ;;  %v241_v17 = vld [vmem:[%s211_s6 + $0x14] sm:$0xf]  ;;  %v2269_v18 = vld [vmem:[%s2961_s1 + $0x8] sm:$0xff]  ;;  %v2282_v19 = vld [vmem:[%s2961_s1 + $0x10] sm:$0xff]  ;;  %vm1372_vm2 = vcmask 130112   ;;  %vm1376_vm3 = vcmask 195712  }
  0x3c   : > { %1795 = vmatpush.msk.msra.mxu1 %vm309_vm0, %v237_v13  ;;  %1880 = vmatpush.msk.msrb.mxu2 %vm309_vm0, %v242_v14  ;;  %v2308_v21 = vld [vmem:[%s2961_s1 + $0x20] sm:$0xff]  ;;  %v2321_v22 = vld [vmem:[%s2961_s1 + $0x28] sm:$0xff]  ;;  %v2334_v23 = vld [vmem:[%s2961_s1 + $0x30] sm:$0xff]  ;;  %vm1380_vm4 = vcmask 261312   ;;  %vm1384_vm5 = vcmask 326912   ;;  %vm1388_vm6 = vcmask 392512  }
  0x3d   : > { %1796 = vmatmul.msk.f32.vlgmr.msra.gmra.mxu1 %vm260_vm1, %v2248_v11  ;;  %1846 = vmatpush.msk.msrb.mxu0 %vm309_vm0, %v240_v15  ;;  %v2347_v24 = vld [vmem:[%s2961_s1 + $0x38] sm:$0xff]  ;;  %v2360_v25 = vld [vmem:[%s2961_s1 + $0x40] sm:$0xff]  ;;  %v2373_v26 = vld [vmem:[%s2961_s1 + $0x48] sm:$0xff]  ;;  %vm1392_vm7 = vcmask 458112   ;;  %vm1396_vm8 = vcmask 523712   ;;  %vm1400_vm9 = vcmask 589312  }
  0x3e   : > { %1897 = vmatpush.msk.msrb.mxu3 %vm309_vm0, %v243_v16  ;;  %1863 = vmatpush.msk.msrb.mxu1 %vm309_vm0, %v241_v17  ;;  %v2386_v27 = vld [vmem:[%s2961_s1 + $0x50] sm:$0xff]  ;;  %v2399_v28 = vld [vmem:[%s2961_s1 + $0x58] sm:$0xff]  ;;  %v2412_v29 = vld [vmem:[%s2961_s1 + $0x60] sm:$0xff]  ;;  %vm1404_vm10 = vcmask 654912   ;;  %vm1408_vm11 = vcmask 720512   ;;  %vm1412_vm12 = vcmask 786112  }
  0x3f   : > { %v2425_v30 = vld [vmem:[%s2961_s1 + $0x68] sm:$0xff]  ;;  %v2438_v31 = vld [vmem:[%s2961_s1 + $0x70] sm:$0xff]  ;;  %v2451_v34 = vld [vmem:[%s2961_s1 + $0x78] sm:$0xff]  ;;  %vm1416_vm13 = vcmask 851712   ;;  %vm2964_vm14 = vcmask 917312   ;;  %vm2963_vm15 = vcmask 982912  }
  0x40   : > { %vm1428_vm0 = vcmask 1048512   ;;  %p1914_p4 = scmp.ne.s32.totalorder %s2102_s14, 1 }
  0x42   : > { %1780 = vmatmul.msk.f32.gmra.mxu0 %vm260_vm1, %v2269_v18 }
  0x43   : > { %1814 = vmatmul.msk.f32.gmra.mxu2 %vm260_vm1, %v2269_v18  ;;  %1831 = vmatmul.msk.f32.gmra.mxu3 %vm260_vm1, %v2269_v18 }
  0x45   : > { %1797 = vmatmul.msk.f32.gmra.mxu1 %vm260_vm1, %v2269_v18 }
  0x4a   : > { %1781 = vmatmul.msk.f32.gmra.mxu0 %vm260_vm1, %v2282_v19 }
  0x4b   : > { %1815 = vmatmul.msk.f32.gmra.mxu2 %vm260_vm1, %v2282_v19  ;;  %1832 = vmatmul.msk.f32.gmra.mxu3 %vm260_vm1, %v2282_v19 }
  0x4d   : > { %1798 = vmatmul.msk.f32.gmra.mxu1 %vm260_vm1, %v2282_v19 }
  0x52   : > { %1782 = vmatmul.msk.f32.gmra.mxu0 %vm260_vm1, %v2295_v20 }
  0x53   : > { %1816 = vmatmul.msk.f32.gmra.mxu2 %vm260_vm1, %v2295_v20  ;;  %1833 = vmatmul.msk.f32.gmra.mxu3 %vm260_vm1, %v2295_v20 }
  0x55   : > { %1799 = vmatmul.msk.f32.gmra.mxu1 %vm260_vm1, %v2295_v20 }
  0x5a   : > { %1783 = vmatmul.msk.f32.gmra.mxu0 %vm260_vm1, %v2308_v21 }
  0x5b   : > { %1817 = vmatmul.msk.f32.gmra.mxu2 %vm260_vm1, %v2308_v21  ;;  %1834 = vmatmul.msk.f32.gmra.mxu3 %vm260_vm1, %v2308_v21 }
  0x5d   : > { %1800 = vmatmul.msk.f32.gmra.mxu1 %vm260_vm1, %v2308_v21 }
  0x62   : > { %1784 = vmatmul.msk.f32.gmra.mxu0 %vm260_vm1, %v2321_v22 }
  0x63   : > { %1818 = vmatmul.msk.f32.gmra.mxu2 %vm260_vm1, %v2321_v22  ;;  %1835 = vmatmul.msk.f32.gmra.mxu3 %vm260_vm1, %v2321_v22 }
  0x65   : > { %1801 = vmatmul.msk.f32.gmra.mxu1 %vm260_vm1, %v2321_v22 }
  0x6a   : > { %1785 = vmatmul.msk.f32.gmra.mxu0 %vm260_vm1, %v2334_v23 }
  0x6b   : > { %1819 = vmatmul.msk.f32.gmra.mxu2 %vm260_vm1, %v2334_v23  ;;  %1836 = vmatmul.msk.f32.gmra.mxu3 %vm260_vm1, %v2334_v23 }
  0x6d   : > { %1802 = vmatmul.msk.f32.gmra.mxu1 %vm260_vm1, %v2334_v23 }
  0x72   : > { %1786 = vmatmul.msk.f32.gmra.mxu0 %vm260_vm1, %v2347_v24 }
  0x73   : > { %1820 = vmatmul.msk.f32.gmra.mxu2 %vm260_vm1, %v2347_v24  ;;  %1837 = vmatmul.msk.f32.gmra.mxu3 %vm260_vm1, %v2347_v24 }
  0x75   : > { %1803 = vmatmul.msk.f32.gmra.mxu1 %vm260_vm1, %v2347_v24 }
  0x7a   : > { %1787 = vmatmul.msk.f32.gmra.mxu0 %vm260_vm1, %v2360_v25 }
  0x7b   : > { %1821 = vmatmul.msk.f32.gmra.mxu2 %vm260_vm1, %v2360_v25  ;;  %1838 = vmatmul.msk.f32.gmra.mxu3 %vm260_vm1, %v2360_v25 }
  0x7d   : > { %1804 = vmatmul.msk.f32.gmra.mxu1 %vm260_vm1, %v2360_v25 }
  0x82   : > { %1788 = vmatmul.msk.f32.gmra.mxu0 %vm260_vm1, %v2373_v26 }
  0x83   : > { %1822 = vmatmul.msk.f32.gmra.mxu2 %vm260_vm1, %v2373_v26  ;;  %1839 = vmatmul.msk.f32.gmra.mxu3 %vm260_vm1, %v2373_v26 }
  0x85   : > { %1805 = vmatmul.msk.f32.gmra.mxu1 %vm260_vm1, %v2373_v26 }
  0x8a   : > { %1789 = vmatmul.msk.f32.gmra.mxu0 %vm260_vm1, %v2386_v27 }
  0x8b   : > { %1823 = vmatmul.msk.f32.gmra.mxu2 %vm260_vm1, %v2386_v27  ;;  %1840 = vmatmul.msk.f32.gmra.mxu3 %vm260_vm1, %v2386_v27 }
  0x8d   : > { %1806 = vmatmul.msk.f32.gmra.mxu1 %vm260_vm1, %v2386_v27 }
  0x92   : > { %1790 = vmatmul.msk.f32.gmra.mxu0 %vm260_vm1, %v2399_v28 }
  0x93   : > { %1824 = vmatmul.msk.f32.gmra.mxu2 %vm260_vm1, %v2399_v28  ;;  %1841 = vmatmul.msk.f32.gmra.mxu3 %vm260_vm1, %v2399_v28 }
  0x95   : > { %1807 = vmatmul.msk.f32.gmra.mxu1 %vm260_vm1, %v2399_v28 }
  0x9a   : > { %1791 = vmatmul.msk.f32.gmra.mxu0 %vm260_vm1, %v2412_v29 }
  0x9b   : > { %1825 = vmatmul.msk.f32.gmra.mxu2 %vm260_vm1, %v2412_v29  ;;  %1842 = vmatmul.msk.f32.gmra.mxu3 %vm260_vm1, %v2412_v29 }
  0x9d   : > { %1808 = vmatmul.msk.f32.gmra.mxu1 %vm260_vm1, %v2412_v29 }
  0xa2   : > { %1792 = vmatmul.msk.f32.gmra.mxu0 %vm260_vm1, %v2425_v30 }
  0xa3   : > { %1826 = vmatmul.msk.f32.gmra.mxu2 %vm260_vm1, %v2425_v30  ;;  %1843 = vmatmul.msk.f32.gmra.mxu3 %vm260_vm1, %v2425_v30 }
  0xa5   : > { %1809 = vmatmul.msk.f32.gmra.mxu1 %vm260_vm1, %v2425_v30 }
  0xaa   : > { %1793 = vmatmul.msk.f32.gmra.mxu0 %vm260_vm1, %v2438_v31 }
  0xab   : > { %1827 = vmatmul.msk.f32.gmra.mxu2 %vm260_vm1, %v2438_v31  ;;  %1844 = vmatmul.msk.f32.gmra.mxu3 %vm260_vm1, %v2438_v31 }
  0xad   : > { %1810 = vmatmul.msk.f32.gmra.mxu1 %vm260_vm1, %v2438_v31 }
  0xb2   : > { %1794 = vmatmul.msk.f32.gmra.mxu0 %vm260_vm1, %v2451_v34 }
  0xb3   : > { %1828 = vmatmul.msk.f32.gmra.mxu2 %vm260_vm1, %v2451_v34  ;;  %1845 = vmatmul.msk.f32.gmra.mxu3 %vm260_vm1, %v2451_v34 }
  0xb5   : > { %1811 = vmatmul.msk.f32.gmra.mxu1 %vm260_vm1, %v2451_v34 }
  0xb7   : > { %v330_v32 = vpop.f32.mrf.mxu0 }
  0xb8   : > { %v854_v33 = vmax.f32 %v330_v32, 0.0 }
  0xba   : > { %983 = vadd.xlane.f32.xlu0 %v854_v33  ;;  %v398_v35 = vpop.f32.mrf.mxu1  ;;  %1847 = vmatmul.msk.f32.vlgmr.msrb.gmra.mxu0 %vm260_vm1, %v2248_v11 }
  0xbb   : > { %v870_v36 = vmax.f32 %v398_v35, 0.0  ;;  %1881 = vmatmul.msk.f32.vlgmr.msrb.gmra.mxu2 %vm260_vm1, %v2248_v11  ;;  %1898 = vmatmul.msk.f32.vlgmr.msrb.gmra.mxu3 %vm260_vm1, %v2248_v11 }
  0xbd   : > { %1015 = vadd.xlane.f32.xlu1 %v870_v36  ;;  %1864 = vmatmul.msk.f32.vlgmr.msrb.gmra.mxu1 %vm260_vm1, %v2248_v11 }
  0xbe   : > { %v466_v37 = vpop.f32.mrf.mxu2  ;;  %v534_v38 = vpop.f32.mrf.mxu3 }
  0xbf   : > { %v886_v39 = vmax.f32 %v466_v37, 0.0  ;;  %v333_v40 = vpop.f32.mrf.mxu0  ;;  %v902_v41 = vmax.f32 %v534_v38, 0.0 }
  0xc0   : > { %v855_v48 = vmax.f32 %v333_v40, 0.0 }
  0xc1   : > { %1047 = vadd.xlane.f32.xlu2 %v886_v39 }
  0xc2   : > { %1079 = vadd.xlane.f32.xlu0 %v902_v41  ;;  %v401_v42 = vpop.f32.mrf.mxu1  ;;  %1848 = vmatmul.msk.f32.gmra.mxu0 %vm260_vm1, %v2269_v18 }
  0xc3   : > { %v871_v43 = vmax.f32 %v401_v42, 0.0  ;;  %1882 = vmatmul.msk.f32.gmra.mxu2 %vm260_vm1, %v2269_v18  ;;  %1899 = vmatmul.msk.f32.gmra.mxu3 %vm260_vm1, %v2269_v18 }
  0xc5   : > { %1865 = vmatmul.msk.f32.gmra.mxu1 %vm260_vm1, %v2269_v18 }
  0xc6   : > { %v469_v44 = vpop.f32.mrf.mxu2  ;;  %v537_v45 = vpop.f32.mrf.mxu3 }
  0xc7   : > { %v903_v46 = vmax.f32 %v537_v45, 0.0  ;;  %v336_v47 = vpop.f32.mrf.mxu0  ;;  %v887_v54 = vmax.f32 %v469_v44, 0.0 }
  0xc8   : > { %v856_v49 = vmax.f32 %v336_v47, 0.0 }
  0xc9   : > { %1081 = vadd.xlane.f32.xlu1 %v903_v46  ;;  %1017 = vadd.xlane.f32.xlu2 %v871_v43 }
  0xca   : > { %985 = vadd.xlane.f32.xlu0 %v855_v48  ;;  %v404_v50 = vpop.f32.mrf.mxu1  ;;  %1849 = vmatmul.msk.f32.gmra.mxu0 %vm260_vm1, %v2282_v19 }
  0xcb   : > { %1883 = vmatmul.msk.f32.gmra.mxu2 %vm260_vm1, %v2282_v19  ;;  %1900 = vmatmul.msk.f32.gmra.mxu3 %vm260_vm1, %v2282_v19  ;;  %v872_v58 = vmax.f32 %v404_v50, 0.0 }
  0xcd   : > { %1866 = vmatmul.msk.f32.gmra.mxu1 %vm260_vm1, %v2282_v19 }
  0xce   : > { %v472_v51 = vpop.f32.mrf.mxu2  ;;  %v540_v52 = vpop.f32.mrf.mxu3 }
  0xcf   : > { %v904_v53 = vmax.f32 %v540_v52, 0.0  ;;  %v339_v55 = vpop.f32.mrf.mxu0  ;;  %v888_v56 = vmax.f32 %v472_v51, 0.0 }
  0xd0   : > { %v857_v63 = vmax.f32 %v339_v55, 0.0 }
  0xd1   : > { %1083 = vadd.xlane.f32.xlu2 %v904_v53  ;;  %987 = vadd.xlane.f32.xlu1 %v856_v49 }
  0xd2   : > { %1049 = vadd.xlane.f32.xlu0 %v887_v54  ;;  %v407_v60 = vpop.f32.mrf.mxu1  ;;  %1850 = vmatmul.msk.f32.gmra.mxu0 %vm260_vm1, %v2295_v20 }
  0xd3   : > { %1884 = vmatmul.msk.f32.gmra.mxu2 %vm260_vm1, %v2295_v20  ;;  %1901 = vmatmul.msk.f32.gmra.mxu3 %vm260_vm1, %v2295_v20  ;;  %v873_v4 = vmax.f32 %v407_v60, 0.0 }
  0xd5   : > { %1867 = vmatmul.msk.f32.gmra.mxu1 %vm260_vm1, %v2295_v20 }
  0xd6   : > { %v475_v57 = vpop.f32.mrf.mxu2  ;;  %v543_v62 = vpop.f32.mrf.mxu3 }
  0xd7   : > { %v889_v59 = vmax.f32 %v475_v57, 0.0  ;;  %v342_v61 = vpop.f32.mrf.mxu0  ;;  %v905_v1 = vmax.f32 %v543_v62, 0.0 }
  0xd8   : > { %v858_v0 = vmax.f32 %v342_v61, 0.0 }
  0xd9   : > { %1053 = vadd.xlane.f32.xlu2 %v889_v59  ;;  %1051 = vadd.xlane.f32.xlu1 %v888_v56 }
  0xda   : > { %1019 = vadd.xlane.f32.xlu0 %v872_v58  ;;  %v410_v2 = vpop.f32.mrf.mxu1  ;;  %1851 = vmatmul.msk.f32.gmra.mxu0 %vm260_vm1, %v2308_v21 }
  0xdb   : > { %1885 = vmatmul.msk.f32.gmra.mxu2 %vm260_vm1, %v2308_v21  ;;  %1902 = vmatmul.msk.f32.gmra.mxu3 %vm260_vm1, %v2308_v21  ;;  %v874_v5 = vmax.f32 %v410_v2, 0.0 }
  0xdd   : > { %1868 = vmatmul.msk.f32.gmra.mxu1 %vm260_vm1, %v2308_v21 }
  0xde   : > { %v478_v3 = vpop.f32.mrf.mxu2  ;;  %v546_v7 = vpop.f32.mrf.mxu3 }
  0xdf   : > { %v890_v6 = vmax.f32 %v478_v3, 0.0  ;;  %v345_v8 = vpop.f32.mrf.mxu0  ;;  %v906_v10 = vmax.f32 %v546_v7, 0.0 }
  0xe0   : > { %v859_v11 = vmax.f32 %v345_v8, 0.0 }
  0xe1   : > { %989 = vadd.xlane.f32.xlu1 %v857_v63  ;;  %991 = vadd.xlane.f32.xlu2 %v858_v0 }
  0xe2   : > { %1085 = vadd.xlane.f32.xlu0 %v905_v1  ;;  %1852 = vmatmul.msk.f32.gmra.mxu0 %vm260_vm1, %v2321_v22  ;;  %v413_v9 = vpop.f32.mrf.mxu1 }
  0xe3   : > { %1886 = vmatmul.msk.f32.gmra.mxu2 %vm260_vm1, %v2321_v22  ;;  %1903 = vmatmul.msk.f32.gmra.mxu3 %vm260_vm1, %v2321_v22  ;;  %v875_v12 = vmax.f32 %v413_v9, 0.0 }
  0xe5   : > { %1869 = vmatmul.msk.f32.gmra.mxu1 %vm260_vm1, %v2321_v22 }
  0xe6   : > { %v481_v13 = vpop.f32.mrf.mxu2  ;;  %v549_v14 = vpop.f32.mrf.mxu3 }
  0xe7   : > { %v348_v15 = vpop.f32.mrf.mxu0  ;;  %v891_v16 = vmax.f32 %v481_v13, 0.0  ;;  %v907_v17 = vmax.f32 %v549_v14, 0.0 }
  0xe8   : > { %v860_v18 = vmax.f32 %v348_v15, 0.0 }
  0xe9   : > { %1021 = vadd.xlane.f32.xlu1 %v873_v4  ;;  %1023 = vadd.xlane.f32.xlu2 %v874_v5  ;;  %v1367_v4 = vlaneseq }
  0xea   : > { %1055 = vadd.xlane.f32.xlu0 %v890_v6  ;;  %1853 = vmatmul.msk.f32.gmra.mxu0 %vm260_vm1, %v2334_v23  ;;  %v416_v19 = vpop.f32.mrf.mxu1 }
  0xeb   : > { %1887 = vmatmul.msk.f32.gmra.mxu2 %vm260_vm1, %v2334_v23  ;;  %1904 = vmatmul.msk.f32.gmra.mxu3 %vm260_vm1, %v2334_v23  ;;  %v876_v22 = vmax.f32 %v416_v19, 0.0 }
  0xed   : > { %1870 = vmatmul.msk.f32.gmra.mxu1 %vm260_vm1, %v2334_v23 }
  0xee   : > { %v484_v20 = vpop.f32.mrf.mxu2  ;;  %v552_v21 = vpop.f32.mrf.mxu3 }
  0xef   : > { %v892_v23 = vmax.f32 %v484_v20, 0.0  ;;  %v908_v32 = vmax.f32 %v552_v21, 0.0  ;;  %v351_v33 = vpop.f32.mrf.mxu0 }
  0xf0   : > { %v861_v37 = vmax.f32 %v351_v33, 0.0 }
  0xf1   : > { %1087 = vadd.xlane.f32.xlu1 %v906_v10  ;;  %993 = vadd.xlane.f32.xlu2 %v859_v11  ;;  %v2581_v10 = vand.u32 127, %v1367_v4 }
  0xf2   : > { %1025 = vadd.xlane.f32.xlu0 %v875_v12  ;;  %1854 = vmatmul.msk.f32.gmra.mxu0 %vm260_vm1, %v2347_v24  ;;  %v419_v35 = vpop.f32.mrf.mxu1 }
  0xf3   : > { %1888 = vmatmul.msk.f32.gmra.mxu2 %vm260_vm1, %v2347_v24  ;;  %1905 = vmatmul.msk.f32.gmra.mxu3 %vm260_vm1, %v2347_v24  ;;  %v2584_v12 = vadd.s32 4294967288, %v2581_v10 }
  0xf5   : > { %1871 = vmatmul.msk.f32.gmra.mxu1 %vm260_vm1, %v2347_v24  ;;  %v877_v24 = vmax.f32 %v419_v35, 0.0 }
  0xf6   : > { %v487_v36 = vpop.f32.mrf.mxu2  ;;  %v555_v39 = vpop.f32.mrf.mxu3 }
  0xf7   : > { %v893_v38 = vmax.f32 %v487_v36, 0.0  ;;  %v354_v40 = vpop.f32.mrf.mxu0  ;;  %v909_v42 = vmax.f32 %v555_v39, 0.0 }
  0xf9   : > { %1057 = vadd.xlane.f32.xlu1 %v891_v16  ;;  %1089 = vadd.xlane.f32.xlu2 %v907_v17 }
  0xfa   : > { %995 = vadd.xlane.f32.xlu0 %v860_v18  ;;  %1855 = vmatmul.msk.f32.gmra.mxu0 %vm260_vm1, %v2360_v25  ;;  %v422_v41 = vpop.f32.mrf.mxu1 }
  0xfb   : > { %1889 = vmatmul.msk.f32.gmra.mxu2 %vm260_vm1, %v2360_v25  ;;  %1906 = vmatmul.msk.f32.gmra.mxu3 %vm260_vm1, %v2360_v25  ;;  %v878_v43 = vmax.f32 %v422_v41, 0.0 }
  0xfd   : > { %1872 = vmatmul.msk.f32.gmra.mxu1 %vm260_vm1, %v2360_v25  ;;  %v862_v25 = vmax.f32 %v354_v40, 0.0 }
  0xfe   : > { %v490_v44 = vpop.f32.mrf.mxu2  ;;  %v558_v45 = vpop.f32.mrf.mxu3 }
  0xff   : > { %v357_v46 = vpop.f32.mrf.mxu0  ;;  %v910_v47 = vmax.f32 %v558_v45, 0.0 }
 0x100   : > { %v863_v48 = vmax.f32 %v357_v46, 0.0 }
 0x101   : > { %1027 = vadd.xlane.f32.xlu1 %v876_v22  ;;  %1059 = vadd.xlane.f32.xlu2 %v892_v23 }
 0x102   : > { %1091 = vadd.xlane.f32.xlu0 %v908_v32  ;;  %1856 = vmatmul.msk.f32.gmra.mxu0 %vm260_vm1, %v2373_v26  ;;  %v425_v49 = vpop.f32.mrf.mxu1 }
 0x103   : > { %1890 = vmatmul.msk.f32.gmra.mxu2 %vm260_vm1, %v2373_v26  ;;  %1907 = vmatmul.msk.f32.gmra.mxu3 %vm260_vm1, %v2373_v26 }
 0x105   : > { %1873 = vmatmul.msk.f32.gmra.mxu1 %vm260_vm1, %v2373_v26  ;;  %v894_v26 = vmax.f32 %v490_v44, 0.0 }
 0x106   : > { %v493_v50 = vpop.f32.mrf.mxu2  ;;  %v561_v51 = vpop.f32.mrf.mxu3 }
 0x107   : > { %v895_v52 = vmax.f32 %v493_v50, 0.0  ;;  %v911_v53 = vmax.f32 %v561_v51, 0.0  ;;  %v360_v54 = vpop.f32.mrf.mxu0 }
 0x109   : > { %1029 = vadd.xlane.f32.xlu2 %v877_v24  ;;  %997 = vadd.xlane.f32.xlu1 %v861_v37  ;;  %v2604_v37 = vadd.s32 4294967280, %v2581_v10 }
 0x10a   : > { %1061 = vadd.xlane.f32.xlu0 %v893_v38  ;;  %1857 = vmatmul.msk.f32.gmra.mxu0 %vm260_vm1, %v2386_v27  ;;  %v428_v55 = vpop.f32.mrf.mxu1 }
 0x10b   : > { %1891 = vmatmul.msk.f32.gmra.mxu2 %vm260_vm1, %v2386_v27  ;;  %1908 = vmatmul.msk.f32.gmra.mxu3 %vm260_vm1, %v2386_v27  ;;  %v880_v57 = vmax.f32 %v428_v55, 0.0 }
 0x10d   : > { %1874 = vmatmul.msk.f32.gmra.mxu1 %vm260_vm1, %v2386_v27  ;;  %v879_v27 = vmax.f32 %v425_v49, 0.0 }
 0x10e   : > { %v496_v56 = vpop.f32.mrf.mxu2  ;;  %v564_v59 = vpop.f32.mrf.mxu3 }
 0x10f   : > { %v896_v58 = vmax.f32 %v496_v56, 0.0  ;;  %v363_v60 = vpop.f32.mrf.mxu0 }
 0x110   : > { %v865_v63 = vmax.f32 %v363_v60, 0.0 }
 0x111   : > { %1093 = vadd.xlane.f32.xlu1 %v909_v42  ;;  %999 = vadd.xlane.f32.xlu2 %v862_v25 }
 0x112   : > { %1031 = vadd.xlane.f32.xlu0 %v878_v43  ;;  %1858 = vmatmul.msk.f32.gmra.mxu0 %vm260_vm1, %v2399_v28  ;;  %v431_v61 = vpop.f32.mrf.mxu1 }
 0x113   : > { %1892 = vmatmul.msk.f32.gmra.mxu2 %vm260_vm1, %v2399_v28  ;;  %1909 = vmatmul.msk.f32.gmra.mxu3 %vm260_vm1, %v2399_v28  ;;  %v881_v0 = vmax.f32 %v431_v61, 0.0 }
 0x115   : > { %1875 = vmatmul.msk.f32.gmra.mxu1 %vm260_vm1, %v2399_v28  ;;  %v864_v28 = vmax.f32 %v360_v54, 0.0 }
 0x116   : > { %v499_v1 = vpop.f32.mrf.mxu2  ;;  %v567_v3 = vpop.f32.mrf.mxu3 }
 0x117   : > { %v366_v5 = vpop.f32.mrf.mxu0  ;;  %v897_v6 = vmax.f32 %v499_v1, 0.0  ;;  %v913_v7 = vmax.f32 %v567_v3, 0.0  ;;  %v2623_v1 = vadd.s32 4294967264, %v2581_v10 }
 0x118   : > { %v866_v9 = vmax.f32 %v366_v5, 0.0 }
 0x119   : > { %1063 = vadd.xlane.f32.xlu1 %v894_v26  ;;  %1095 = vadd.xlane.f32.xlu2 %v910_v47 }
 0x11a   : > { %1001 = vadd.xlane.f32.xlu0 %v863_v48  ;;  %1859 = vmatmul.msk.f32.gmra.mxu0 %vm260_vm1, %v2412_v29  ;;  %v434_v11 = vpop.f32.mrf.mxu1 }
 0x11b   : > { %1893 = vmatmul.msk.f32.gmra.mxu2 %vm260_vm1, %v2412_v29  ;;  %1910 = vmatmul.msk.f32.gmra.mxu3 %vm260_vm1, %v2412_v29  ;;  %v882_v16 = vmax.f32 %v434_v11, 0.0 }
 0x11d   : > { %1876 = vmatmul.msk.f32.gmra.mxu1 %vm260_vm1, %v2412_v29  ;;  %v912_v29 = vmax.f32 %v564_v59, 0.0 }
 0x11e   : > { %v502_v13 = vpop.f32.mrf.mxu2  ;;  %v570_v14 = vpop.f32.mrf.mxu3 }
 0x11f   : > { %v898_v17 = vmax.f32 %v502_v13, 0.0  ;;  %v914_v33 = vmax.f32 %v570_v14, 0.0  ;;  %v369_v24 = vpop.f32.mrf.mxu0 }
 0x120   : > { %v867_v45 = vmax.f32 %v369_v24, 0.0 }
 0x121   : > { %1033 = vadd.xlane.f32.xlu1 %v879_v27  ;;  %1065 = vadd.xlane.f32.xlu2 %v895_v52  ;;  %v2614_v27 = vadd.s32 4294967272, %v2581_v10 }
 0x122   : > { %1097 = vadd.xlane.f32.xlu0 %v911_v53  ;;  %1860 = vmatmul.msk.f32.gmra.mxu0 %vm260_vm1, %v2425_v30  ;;  %v437_v39 = vpop.f32.mrf.mxu1 }
 0x123   : > { %1894 = vmatmul.msk.f32.gmra.mxu2 %vm260_vm1, %v2425_v30  ;;  %1911 = vmatmul.msk.f32.gmra.mxu3 %vm260_vm1, %v2425_v30  ;;  %v883_v43 = vmax.f32 %v437_v39, 0.0 }
 0x125   : > { %1877 = vmatmul.msk.f32.gmra.mxu1 %vm260_vm1, %v2425_v30 }
 0x126   : > { %v505_v38 = vpop.f32.mrf.mxu2  ;;  %v573_v51 = vpop.f32.mrf.mxu3 }
 0x127   : > { %v899_v47 = vmax.f32 %v505_v38, 0.0  ;;  %v372_v53 = vpop.f32.mrf.mxu0 }
 0x128   : > { %v868_v60 = vmax.f32 %v372_v53, 0.0 }
 0x129   : > { %1035 = vadd.xlane.f32.xlu2 %v880_v57  ;;  %1003 = vadd.xlane.f32.xlu1 %v864_v28  ;;  %v915_v28 = vmax.f32 %v573_v51, 0.0 }
 0x12a   : > { %1067 = vadd.xlane.f32.xlu0 %v896_v58  ;;  %1861 = vmatmul.msk.f32.gmra.mxu0 %vm260_vm1, %v2438_v31  ;;  %v440_v54 = vpop.f32.mrf.mxu1 }
 0x12b   : > { %1895 = vmatmul.msk.f32.gmra.mxu2 %vm260_vm1, %v2438_v31  ;;  %1912 = vmatmul.msk.f32.gmra.mxu3 %vm260_vm1, %v2438_v31 }
 0x12d   : > { %v984_v62 = vpop.xlane.xlu0 %983  ;;  %1878 = vmatmul.msk.f32.gmra.mxu1 %vm260_vm1, %v2438_v31 }
 0x12e   : > { %v1369_v23 = vperm.slane %v984_v62, %v2581_v10  ;;  %v508_v52 = vpop.f32.mrf.mxu2 }
 0x12f   : > { %v375_v3 = vpop.f32.mrf.mxu0 }
 0x130   : > { %v1016_v2 = vpop.xlane.xlu1 %1015  ;;  %v869_v14 = vmax.f32 %v375_v3, 0.0 }
 0x131   : > { %1099 = vadd.xlane.f32.xlu1 %v912_v29  ;;  %1005 = vadd.xlane.f32.xlu2 %v865_v63  ;;  %v1430_v18 = vperm.slane %v1016_v2, %v2581_v10  ;;  %v884_v29 = vmax.f32 %v440_v54, 0.0  ;;  %v576_v2 = vpop.f32.mrf.mxu3 }
 0x132   : > { %1037 = vadd.xlane.f32.xlu0 %v881_v0  ;;  %1862 = vmatmul.msk.f32.gmra.mxu0 %vm260_vm1, %v2451_v34 }
 0x133   : > { %1896 = vmatmul.msk.f32.gmra.mxu2 %vm260_vm1, %v2451_v34  ;;  %1913 = vmatmul.msk.f32.gmra.mxu3 %vm260_vm1, %v2451_v34 }
 0x134   : > { %v1048_v30 = vpop.xlane.xlu2 %1047 }
 0x135   : > { %v1080_v8 = vpop.xlane.xlu0 %1079  ;;  %1879 = vmatmul.msk.f32.gmra.mxu1 %vm260_vm1, %v2451_v34  ;;  %v1461_v46 = vperm.slane %v1048_v30, %v2581_v10  ;;  %vm1647_vm1 = vcmask 1041409  }
 0x136   : > { %v1492_v19 = vperm.slane %v1080_v8, %v2581_v10  ;;  %v511_v4 = vpop.f32.mrf.mxu2  ;;  %v900_v8 = vmax.f32 %v508_v52, 0.0 }
 0x139   : > { %1069 = vadd.xlane.f32.xlu1 %v897_v6  ;;  %1101 = vadd.xlane.f32.xlu2 %v913_v7 }
 0x13a   : > { %1007 = vadd.xlane.f32.xlu0 %v866_v9  ;;  %v916_v9 = vmax.f32 %v576_v2, 0.0 }
 0x13c   : > { %v1082_v31 = vpop.xlane.xlu1 %1081  ;;  %v1018_v15 = vpop.xlane.xlu2 %1017 }
 0x13d   : > { %v1493_v20 = vperm.slane %v1082_v31, %v2584_v12  ;;  %v1431_v21 = vperm.slane %v1018_v15, %v2584_v12  ;;  %v986_v22 = vpop.xlane.xlu0 %985 }
 0x13e   : > { %v1371_v32 = vperm.slane %v986_v22, %v2584_v12 }
 0x13f   : > { %v1494_v35 = vsel %vm1372_vm2, %v1493_v20, %v1492_v19  ;;  %v1432_v36 = vsel %vm1372_vm2, %v1431_v21, %v1430_v18  ;;  %v579_v18 = vpop.f32.mrf.mxu3 }
 0x140   : > { %v1373_v34 = vsel %vm1372_vm2, %v1371_v32, %v1369_v23  ;;  %v901_v32 = vmax.f32 %v511_v4, 0.0 }
 0x141   : > { %1039 = vadd.xlane.f32.xlu1 %v882_v16  ;;  %1071 = vadd.xlane.f32.xlu2 %v898_v17  ;;  %v443_v17 = vpop.f32.mrf.mxu1 }
 0x142   : > { %1103 = vadd.xlane.f32.xlu0 %v914_v33  ;;  %v885_v23 = vmax.f32 %v443_v17, 0.0 }
 0x144   : > { %v1084_v40 = vpop.xlane.xlu2 %1083  ;;  %v988_v41 = vpop.xlane.xlu1 %987 }
 0x145   : > { %v1495_v25 = vperm.slane %v1084_v40, %v2604_v37  ;;  %v1375_v42 = vperm.slane %v988_v41, %v2604_v37  ;;  %v1050_v44 = vpop.xlane.xlu0 %1049  ;;  %v602_v40 = vpop.f32.mrf.mxu0  ;;  %v2638_v41 = vadd.s32 4294967256, %v2581_v10 }
 0x146   : > { %v1462_v26 = vperm.slane %v1050_v44, %v2584_v12 }
 0x147   : > { %v1496_v48 = vsel %vm1376_vm3, %v1495_v25, %v1494_v35  ;;  %v1377_v49 = vsel %vm1376_vm3, %v1375_v42, %v1373_v34  ;;  %v738_v34 = vpop.f32.mrf.mxu2 }
 0x148   : > { %v1463_v50 = vsel %vm1372_vm2, %v1462_v26, %v1461_v46  ;;  %v950_v52 = vmax.f32 %v738_v34, 0.0 }
 0x149   : > { %1041 = vadd.xlane.f32.xlu2 %v883_v43  ;;  %1009 = vadd.xlane.f32.xlu1 %v867_v45  ;;  %v670_v25 = vpop.f32.mrf.mxu1 }
 0x14a   : > { %1073 = vadd.xlane.f32.xlu0 %v899_v47  ;;  %v934_v46 = vmax.f32 %v670_v25, 0.0  ;;  %v918_v47 = vmax.f32 %v602_v40, 0.0 }
 0x14c   : > { %v1054_v55 = vpop.xlane.xlu2 %1053  ;;  %v1052_v56 = vpop.xlane.xlu1 %1051 }
 0x14d   : > { %v1466_v57 = vperm.slane %v1054_v55, %v2614_v27  ;;  %v1464_v58 = vperm.slane %v1052_v56, %v2604_v37  ;;  %v1020_v59 = vpop.xlane.xlu0 %1019  ;;  %v2647_v55 = vadd.s32 4294967248, %v2581_v10  ;;  %v605_v56 = vpop.f32.mrf.mxu0 }
 0x14e   : > { %v1433_v61 = vperm.slane %v1020_v59, %v2604_v37 }
 0x14f   : > { %v1465_v62 = vsel %vm1376_vm3, %v1464_v58, %v1463_v50  ;;  %v741_v54 = vpop.f32.mrf.mxu2 }
 0x150   : > { %v1434_v63 = vsel %vm1376_vm3, %v1433_v61, %v1432_v36  ;;  %v1467_v0 = vsel %vm1380_vm4, %v1466_v57, %v1465_v62  ;;  %v917_v36 = vmax.f32 %v579_v18, 0.0  ;;  %v951_v58 = vmax.f32 %v741_v54, 0.0 }
 0x151   : > { %1105 = vadd.xlane.f32.xlu1 %v915_v28  ;;  %1011 = vadd.xlane.f32.xlu2 %v868_v60 }
 0x152   : > { %1043 = vadd.xlane.f32.xlu0 %v884_v29  ;;  %v919_v29 = vmax.f32 %v605_v56, 0.0 }
 0x154   : > { %v990_v5 = vpop.xlane.xlu1 %989  ;;  %v992_v30 = vpop.xlane.xlu2 %991 }
 0x155   : > { %v1379_v6 = vperm.slane %v990_v5, %v2614_v27  ;;  %v1383_v7 = vperm.slane %v992_v30, %v2623_v1  ;;  %v1086_v11 = vpop.xlane.xlu0 %1085 }
 0x156   : > { %v1497_v13 = vperm.slane %v1086_v11, %v2614_v27 }
 0x157   : > { %v1381_v31 = vsel %vm1380_vm4, %v1379_v6, %v1377_v49  ;;  %v806_v49 = vpop.f32.mrf.mxu3  ;;  %v744_v30 = vpop.f32.mrf.mxu2 }
 0x158   : > { %v1385_v15 = vsel %vm1384_vm5, %v1383_v7, %v1381_v31  ;;  %v1498_v16 = vsel %vm1380_vm4, %v1497_v13, %v1496_v48  ;;  %v966_v3 = vmax.f32 %v806_v49, 0.0  ;;  %v952_v11 = vmax.f32 %v744_v30, 0.0 }
 0x159   : > { %1075 = vadd.xlane.f32.xlu1 %v900_v8  ;;  %1107 = vadd.xlane.f32.xlu2 %v916_v9 }
 0x15a   : > { %1013 = vadd.xlane.f32.xlu0 %v869_v14 }
 0x15c   : > { %v1022_v19 = vpop.xlane.xlu1 %1021  ;;  %v1024_v20 = vpop.xlane.xlu2 %1023 }
 0x15d   : > { %v1435_v21 = vperm.slane %v1022_v19, %v2614_v27  ;;  %v1437_v22 = vperm.slane %v1024_v20, %v2623_v1  ;;  %v1056_v33 = vpop.xlane.xlu0 %1055 }
 0x15e   : > { %v1468_v35 = vperm.slane %v1056_v33, %v2623_v1 }
 0x15f   : > { %v1436_v24 = vsel %vm1380_vm4, %v1435_v21, %v1434_v63  ;;  %v673_v63 = vpop.f32.mrf.mxu1  ;;  %v809_v5 = vpop.f32.mrf.mxu3  ;;  %v2662_v21 = vadd.s32 4294967240, %v2581_v10 }
 0x160   : > { %v1438_v38 = vsel %vm1384_vm5, %v1437_v22, %v1436_v24  ;;  %v1469_v39 = vsel %vm1384_vm5, %v1468_v35, %v1467_v0  ;;  %v967_v13 = vmax.f32 %v809_v5, 0.0  ;;  %v935_v18 = vmax.f32 %v673_v63, 0.0 }
 0x161   : > { %1045 = vadd.xlane.f32.xlu1 %v885_v23  ;;  %1077 = vadd.xlane.f32.xlu2 %v901_v32 }
 0x162   : > { %1109 = vadd.xlane.f32.xlu0 %v917_v36 }
 0x164   : > { %v1088_v42 = vpop.xlane.xlu1 %1087  ;;  %v994_v43 = vpop.xlane.xlu2 %993 }
 0x165   : > { %v1499_v44 = vperm.slane %v1088_v42, %v2623_v1  ;;  %v1387_v45 = vperm.slane %v994_v43, %v2638_v41  ;;  %v1026_v26 = vpop.xlane.xlu0 %1025 }
 0x166   : > { %v1439_v48 = vperm.slane %v1026_v26, %v2638_v41 }
 0x167   : > { %v1500_v50 = vsel %vm1384_vm5, %v1499_v44, %v1498_v16  ;;  %v1389_v51 = vsel %vm1388_vm6, %v1387_v45, %v1385_v15  ;;  %v608_v15 = vpop.f32.mrf.mxu0  ;;  %v676_v20 = vpop.f32.mrf.mxu1  ;;  %v2671_v45 = vadd.s32 4294967232, %v2581_v10 }
 0x168   : > { %v1440_v53 = vsel %vm1388_vm6, %v1439_v48, %v1438_v38  ;;  %v812_v22 = vpop.f32.mrf.mxu3  ;;  %v936_v36 = vmax.f32 %v676_v20, 0.0  ;;  %v920_v43 = vmax.f32 %v608_v15, 0.0 }
 0x169   : > { %1143 = vadd.xlane.f32.xlu2 %v934_v46  ;;  %1111 = vadd.xlane.f32.xlu1 %v918_v47  ;;  %v968_v34 = vmax.f32 %v812_v22, 0.0 }
 0x16a   : > { %1175 = vadd.xlane.f32.xlu0 %v950_v52 }
 0x16c   : > { %v1058_v28 = vpop.xlane.xlu1 %1057  ;;  %v1090_v57 = vpop.xlane.xlu2 %1089 }
 0x16d   : > { %v1470_v59 = vperm.slane %v1058_v28, %v2638_v41  ;;  %v1501_v60 = vperm.slane %v1090_v57, %v2638_v41  ;;  %v996_v61 = vpop.xlane.xlu0 %995 }
 0x16e   : > { %v1391_v62 = vperm.slane %v996_v61, %v2647_v55 }
 0x16f   : > { %v1471_v0 = vsel %vm1388_vm6, %v1470_v59, %v1469_v39  ;;  %v1502_v2 = vsel %vm1388_vm6, %v1501_v60, %v1500_v50  ;;  %v747_v39 = vpop.f32.mrf.mxu2  ;;  %v611_v44 = vpop.f32.mrf.mxu0  ;;  %v2680_v60 = vadd.s32 4294967224, %v2581_v10 }
 0x170   : > { %v1393_v4 = vsel %vm1392_vm7, %v1391_v62, %v1389_v51  ;;  %v679_v46 = vpop.f32.mrf.mxu1  ;;  %v921_v52 = vmax.f32 %v611_v44, 0.0  ;;  %v815_v54 = vpop.f32.mrf.mxu3  ;;  %v953_v57 = vmax.f32 %v747_v39, 0.0 }
 0x171   : > { %1177 = vadd.xlane.f32.xlu1 %v951_v58  ;;  %1113 = vadd.xlane.f32.xlu2 %v919_v29  ;;  %v937_v50 = vmax.f32 %v679_v46, 0.0 }
 0x172   : > { %1207 = vadd.xlane.f32.xlu0 %v966_v3 }
 0x174   : > { %v1028_v6 = vpop.xlane.xlu1 %1027  ;;  %v1060_v7 = vpop.xlane.xlu2 %1059 }
 0x175   : > { %v1441_v8 = vperm.slane %v1028_v6, %v2647_v55  ;;  %v1472_v9 = vperm.slane %v1060_v7, %v2647_v55  ;;  %v1092_v14 = vpop.xlane.xlu0 %1091 }
 0x176   : > { %v1503_v31 = vperm.slane %v1092_v14, %v2647_v55 }
 0x177   : > { %v1442_v16 = vsel %vm1392_vm7, %v1441_v8, %v1440_v53  ;;  %v1473_v17 = vsel %vm1392_vm7, %v1472_v9, %v1471_v0  ;;  %v750_v59 = vpop.f32.mrf.mxu2  ;;  %v614_v61 = vpop.f32.mrf.mxu0  ;;  %v969_v8 = vmax.f32 %v815_v54, 0.0 }
 0x178   : > { %v1504_v19 = vsel %vm1392_vm7, %v1503_v31, %v1502_v2  ;;  %v682_v29 = vpop.f32.mrf.mxu1  ;;  %v954_v0 = vmax.f32 %v750_v59, 0.0  ;;  %v922_v5 = vmax.f32 %v614_v61, 0.0 }
 0x179   : > { %1209 = vadd.xlane.f32.xlu1 %v967_v13  ;;  %1179 = vadd.xlane.f32.xlu2 %v952_v11  ;;  %v818_v11 = vpop.f32.mrf.mxu3 }
 0x17a   : > { %1145 = vadd.xlane.f32.xlu0 %v935_v18  ;;  %v970_v18 = vmax.f32 %v818_v11, 0.0 }
 0x17c   : > { %v1030_v23 = vpop.xlane.xlu2 %1029  ;;  %v998_v32 = vpop.xlane.xlu1 %997 }
 0x17d   : > { %v1443_v33 = vperm.slane %v1030_v23, %v2662_v21  ;;  %v1395_v35 = vperm.slane %v998_v32, %v2662_v21  ;;  %v1062_v24 = vpop.xlane.xlu0 %1061 }
 0x17e   : > { %v1474_v38 = vperm.slane %v1062_v24, %v2662_v21 }
 0x17f   : > { %v1444_v40 = vsel %vm1396_vm8, %v1443_v33, %v1442_v16  ;;  %v1397_v25 = vsel %vm1396_vm8, %v1395_v35, %v1393_v4  ;;  %v753_v13 = vpop.f32.mrf.mxu2  ;;  %v617_v23 = vpop.f32.mrf.mxu0  ;;  %v938_v35 = vmax.f32 %v682_v29, 0.0 }
 0x180   : > { %v1475_v42 = vsel %vm1396_vm8, %v1474_v38, %v1473_v17  ;;  %v955_v17 = vmax.f32 %v753_v13, 0.0  ;;  %v685_v20 = vpop.f32.mrf.mxu1 }
 0x181   : > { %1147 = vadd.xlane.f32.xlu1 %v936_v36  ;;  %1211 = vadd.xlane.f32.xlu2 %v968_v34  ;;  %v2695_v34 = vadd.s32 4294967216, %v2581_v10  ;;  %v821_v24 = vpop.f32.mrf.mxu3 }
 0x182   : > { %1115 = vadd.xlane.f32.xlu0 %v920_v43  ;;  %v971_v43 = vmax.f32 %v821_v24, 0.0 }
 0x184   : > { %v1094_v26 = vpop.xlane.xlu1 %1093  ;;  %v1000_v47 = vpop.xlane.xlu2 %999 }
 0x185   : > { %v1505_v48 = vperm.slane %v1094_v26, %v2662_v21  ;;  %v1399_v49 = vperm.slane %v1000_v47, %v2671_v45  ;;  %v1032_v51 = vpop.xlane.xlu0 %1031 }
 0x186   : > { %v1445_v53 = vperm.slane %v1032_v51, %v2671_v45  ;;  %v923_v51 = vmax.f32 %v617_v23, 0.0 }
 0x187   : > { %v1506_v56 = vsel %vm1396_vm8, %v1505_v48, %v1504_v19  ;;  %v1401_v28 = vsel %vm1400_vm9, %v1399_v49, %v1397_v25  ;;  %v756_v26 = vpop.f32.mrf.mxu2 }
 0x188   : > { %v1446_v58 = vsel %vm1400_vm9, %v1445_v53, %v1444_v40  ;;  %v688_v49 = vpop.f32.mrf.mxu1  ;;  %v2704_v53 = vadd.s32 4294967208, %v2581_v10 }
 0x189   : > { %1149 = vadd.xlane.f32.xlu2 %v937_v50  ;;  %1117 = vadd.xlane.f32.xlu1 %v921_v52  ;;  %v620_v52 = vpop.f32.mrf.mxu0 }
 0x18a   : > { %1181 = vadd.xlane.f32.xlu0 %v953_v57  ;;  %v924_v61 = vmax.f32 %v620_v52, 0.0 }
 0x18c   : > { %v1064_v62 = vpop.xlane.xlu1 %1063  ;;  %v1096_v63 = vpop.xlane.xlu2 %1095 }
 0x18d   : > { %v1476_v2 = vperm.slane %v1064_v62, %v2671_v45  ;;  %v1507_v3 = vperm.slane %v1096_v63, %v2671_v45  ;;  %v1002_v4 = vpop.xlane.xlu0 %1001  ;;  %v824_v62 = vpop.f32.mrf.mxu3 }
 0x18e   : > { %v1403_v30 = vperm.slane %v1002_v4, %v2680_v60 }
 0x18f   : > { %v1477_v6 = vsel %vm1400_vm9, %v1476_v2, %v1475_v42  ;;  %v1508_v7 = vsel %vm1400_vm9, %v1507_v3, %v1506_v56  ;;  %v939_v42 = vmax.f32 %v685_v20, 0.0  ;;  %v956_v3 = vmax.f32 %v756_v26, 0.0 }
 0x190   : > { %v1405_v9 = vsel %vm1404_vm10, %v1403_v30, %v1401_v28  ;;  %v691_v2 = vpop.f32.mrf.mxu1  ;;  %v2713_v30 = vadd.s32 4294967200, %v2581_v10  ;;  %v2728_v26 = vadd.s32 4294967192, %v2581_v10 }
 0x191   : > { %1183 = vadd.xlane.f32.xlu1 %v954_v0  ;;  %1119 = vadd.xlane.f32.xlu2 %v922_v5  ;;  %v759_v5 = vpop.f32.mrf.mxu2 }
 0x192   : > { %1213 = vadd.xlane.f32.xlu0 %v969_v8 }
 0x194   : > { %v1034_v14 = vpop.xlane.xlu1 %1033  ;;  %v1066_v31 = vpop.xlane.xlu2 %1065 }
 0x195   : > { %v1447_v15 = vperm.slane %v1034_v14, %v2680_v60  ;;  %v1478_v16 = vperm.slane %v1066_v31, %v2680_v60  ;;  %v1098_v19 = vpop.xlane.xlu0 %1097  ;;  %v827_v20 = vpop.f32.mrf.mxu3 }
 0x196   : > { %v1509_v22 = vperm.slane %v1098_v19, %v2680_v60 }
 0x197   : > { %v1448_v32 = vsel %vm1404_vm10, %v1447_v15, %v1446_v58  ;;  %v1479_v33 = vsel %vm1404_vm10, %v1478_v16, %v1477_v6  ;;  %v940_v58 = vmax.f32 %v688_v49, 0.0  ;;  %v623_v6 = vpop.f32.mrf.mxu0 }
 0x198   : > { %v1510_v36 = vsel %vm1404_vm10, %v1509_v22, %v1508_v7  ;;  %v925_v31 = vmax.f32 %v623_v6, 0.0  ;;  %v694_v22 = vpop.f32.mrf.mxu1 }
 0x199   : > { %1215 = vadd.xlane.f32.xlu1 %v970_v18  ;;  %1185 = vadd.xlane.f32.xlu2 %v955_v17  ;;  %v972_v18 = vmax.f32 %v824_v62, 0.0  ;;  %v762_v23 = vpop.f32.mrf.mxu2 }
 0x19a   : > { %1151 = vadd.xlane.f32.xlu0 %v938_v35  ;;  %v958_v24 = vmax.f32 %v762_v23, 0.0 }
 0x19c   : > { %v1036_v38 = vpop.xlane.xlu2 %1035  ;;  %v1004_v39 = vpop.xlane.xlu1 %1003 }
 0x19d   : > { %v1449_v40 = vperm.slane %v1036_v38, %v2695_v34  ;;  %v1407_v25 = vperm.slane %v1004_v39, %v2695_v34  ;;  %v1068_v44 = vpop.xlane.xlu0 %1067  ;;  %v973_v38 = vmax.f32 %v827_v20, 0.0 }
 0x19e   : > { %v1480_v46 = vperm.slane %v1068_v44, %v2695_v34  ;;  %v941_v44 = vmax.f32 %v691_v2, 0.0 }
 0x19f   : > { %v1450_v47 = vsel %vm1408_vm11, %v1449_v40, %v1448_v32  ;;  %v1409_v48 = vsel %vm1408_vm11, %v1407_v25, %v1405_v9  ;;  %v957_v9 = vmax.f32 %v759_v5, 0.0  ;;  %v626_v25 = vpop.f32.mrf.mxu0 }
 0x1a0   : > { %v1481_v50 = vsel %vm1408_vm11, %v1480_v46, %v1479_v33  ;;  %v926_v62 = vmax.f32 %v626_v25, 0.0 }
 0x1a1   : > { %1153 = vadd.xlane.f32.xlu1 %v939_v42  ;;  %1217 = vadd.xlane.f32.xlu2 %v971_v43 }
 0x1a2   : > { %1121 = vadd.xlane.f32.xlu0 %v923_v51 }
 0x1a4   : > { %v1100_v54 = vpop.xlane.xlu1 %1099  ;;  %v1006_v56 = vpop.xlane.xlu2 %1005 }
 0x1a5   : > { %v1511_v28 = vperm.slane %v1100_v54, %v2695_v34  ;;  %v1411_v57 = vperm.slane %v1006_v56, %v2704_v53  ;;  %v1038_v59 = vpop.xlane.xlu0 %1037  ;;  %v942_v54 = vmax.f32 %v694_v22, 0.0 }
 0x1a6   : > { %v1451_v29 = vperm.slane %v1038_v59, %v2704_v53 }
 0x1a7   : > { %v1512_v63 = vsel %vm1408_vm11, %v1511_v28, %v1510_v36  ;;  %v1413_v0 = vsel %vm1412_vm12, %v1411_v57, %v1409_v48  ;;  %v697_v48 = vpop.f32.mrf.mxu1 }
 0x1a8   : > { %v1452_v4 = vsel %vm1412_vm12, %v1451_v29, %v1450_v47  ;;  %v830_v47 = vpop.f32.mrf.mxu3  ;;  %v943_v6 = vmax.f32 %v697_v48, 0.0 }
 0x1a9   : > { %1155 = vadd.xlane.f32.xlu2 %v940_v58  ;;  %1123 = vadd.xlane.f32.xlu1 %v924_v61  ;;  %v974_v56 = vmax.f32 %v830_v47, 0.0  ;;  %v765_v58 = vpop.f32.mrf.mxu2 }
 0x1aa   : > { %1187 = vadd.xlane.f32.xlu0 %v956_v3 }
 0x1ac   : > { %v1070_v7 = vpop.xlane.xlu1 %1069  ;;  %v1102_v8 = vpop.xlane.xlu2 %1101 }
 0x1ad   : > { %v1482_v11 = vperm.slane %v1070_v7, %v2704_v53  ;;  %v1513_v13 = vperm.slane %v1102_v8, %v2704_v53  ;;  %v1008_v14 = vpop.xlane.xlu0 %1007 }
 0x1ae   : > { %v1415_v15 = vperm.slane %v1008_v14, %v2713_v30 }
 0x1af   : > { %v1483_v16 = vsel %vm1412_vm12, %v1482_v11, %v1481_v50  ;;  %v1514_v17 = vsel %vm1412_vm12, %v1513_v13, %v1512_v63  ;;  %v629_v63 = vpop.f32.mrf.mxu0  ;;  %v700_v11 = vpop.f32.mrf.mxu1 }
 0x1b0   : > { %v1417_v19 = vsel %vm1416_vm13, %v1415_v15, %v1413_v0  ;;  %v2737_v0 = vadd.s32 4294967184, %v2581_v10  ;;  %v927_v8 = vmax.f32 %v629_v63, 0.0 }
 0x1b1   : > { %1189 = vadd.xlane.f32.xlu1 %v957_v9  ;;  %1125 = vadd.xlane.f32.xlu2 %v925_v31  ;;  %v959_v31 = vmax.f32 %v765_v58, 0.0  ;;  %v944_v58 = vmax.f32 %v700_v11, 0.0 }
 0x1b2   : > { %1219 = vadd.xlane.f32.xlu0 %v972_v18  ;;  %v2746_v18 = vadd.s32 4294967176, %v2581_v10 }
 0x1b4   : > { %v1040_v32 = vpop.xlane.xlu1 %1039  ;;  %v1072_v33 = vpop.xlane.xlu2 %1071 }
 0x1b5   : > { %v1453_v35 = vperm.slane %v1040_v32, %v2713_v30  ;;  %v1484_v36 = vperm.slane %v1072_v33, %v2713_v30  ;;  %v1104_v39 = vpop.xlane.xlu0 %1103 }
 0x1b6   : > { %v1515_v40 = vperm.slane %v1104_v39, %v2713_v30 }
 0x1b7   : > { %v1454_v42 = vsel %vm1416_vm13, %v1453_v35, %v1452_v4  ;;  %v1485_v43 = vsel %vm1416_vm13, %v1484_v36, %v1483_v16  ;;  %v768_v16 = vpop.f32.mrf.mxu2 }
 0x1b8   : > { %v1516_v46 = vsel %vm1416_vm13, %v1515_v40, %v1514_v17  ;;  %v833_v17 = vpop.f32.mrf.mxu3  ;;  %v960_v23 = vmax.f32 %v768_v16, 0.0 }
 0x1b9   : > { %1221 = vadd.xlane.f32.xlu1 %v973_v38  ;;  %1191 = vadd.xlane.f32.xlu2 %v958_v24  ;;  %v975_v40 = vmax.f32 %v833_v17, 0.0 }
 0x1ba   : > { %1157 = vadd.xlane.f32.xlu0 %v941_v44 }
 0x1bc   : > { %v1042_v49 = vpop.xlane.xlu2 %1041  ;;  %v1010_v50 = vpop.xlane.xlu1 %1009 }
 0x1bd   : > { %v1455_v51 = vperm.slane %v1042_v49, %v2728_v26  ;;  %v1419_v52 = vperm.slane %v1010_v50, %v2728_v26  ;;  %v1074_v28 = vpop.xlane.xlu0 %1073 }
 0x1be   : > { %v1486_v57 = vperm.slane %v1074_v28, %v2728_v26 }
 0x1bf   : > { %v1456_v59 = vsel %vm2964_vm14, %v1455_v51, %v1454_v42  ;;  %v1421_v61 = vsel %vm2964_vm14, %v1419_v52, %v1417_v19  ;;  %v632_v19 = vpop.f32.mrf.mxu0  ;;  %v703_v42 = vpop.f32.mrf.mxu1 }
 0x1c0   : > { %v1487_v29 = vsel %vm2964_vm14, %v1486_v57, %v1485_v43  ;;  %v928_v36 = vmax.f32 %v632_v19, 0.0  ;;  %v771_v43 = vpop.f32.mrf.mxu2  ;;  %v836_v44 = vpop.f32.mrf.mxu3 }
 0x1c1   : > { %1159 = vadd.xlane.f32.xlu1 %v942_v54  ;;  %1223 = vadd.xlane.f32.xlu2 %v974_v56  ;;  %v961_v50 = vmax.f32 %v771_v43, 0.0  ;;  %v976_v51 = vmax.f32 %v836_v44, 0.0 }
 0x1c2   : > { %1127 = vadd.xlane.f32.xlu0 %v926_v62 }
 0x1c4   : > { %v1106_v2 = vpop.xlane.xlu1 %1105  ;;  %v1012_v3 = vpop.xlane.xlu2 %1011 }
 0x1c5   : > { %v1517_v4 = vperm.slane %v1106_v2, %v2728_v26  ;;  %v1423_v5 = vperm.slane %v1012_v3, %v2737_v0  ;;  %v1044_v7 = vpop.xlane.xlu0 %1043 }
 0x1c6   : > { %v1457_v9 = vperm.slane %v1044_v7, %v2737_v0 }
 0x1c7   : > { %v1518_v13 = vsel %vm2964_vm14, %v1517_v4, %v1516_v46  ;;  %v1425_v14 = vsel %vm2963_vm15, %v1423_v5, %v1421_v61  ;;  %vm1651_vm14 = vcmask 1043459   ;;  %v635_v57 = vpop.f32.mrf.mxu0  ;;  %v706_v63 = vpop.f32.mrf.mxu1  ;;  %v945_v4 = vmax.f32 %v703_v42, 0.0 }
 0x1c8   : > { %v1458_v15 = vsel %vm2963_vm15, %v1457_v9, %v1456_v59  ;;  %v946_v5 = vmax.f32 %v706_v63, 0.0  ;;  %v839_v7 = vpop.f32.mrf.mxu3  ;;  %v929_v9 = vmax.f32 %v635_v57, 0.0 }
 0x1c9   : > { %1161 = vadd.xlane.f32.xlu2 %v943_v6  ;;  %1129 = vadd.xlane.f32.xlu1 %v927_v8  ;;  %v774_v8 = vpop.f32.mrf.mxu2 }
 0x1ca   : > { %1193 = vadd.xlane.f32.xlu0 %v959_v31  ;;  %v962_v31 = vmax.f32 %v774_v8, 0.0 }
 0x1cc   : > { %v1076_v20 = vpop.xlane.xlu1 %1075  ;;  %v1108_v22 = vpop.xlane.xlu2 %1107 }
 0x1cd   : > { %v1488_v32 = vperm.slane %v1076_v20, %v2737_v0  ;;  %v1519_v33 = vperm.slane %v1108_v22, %v2737_v0  ;;  %v1014_v35 = vpop.xlane.xlu0 %1013 }
 0x1ce   : > { %v1427_v24 = vperm.slane %v1014_v35, %v2746_v18  ;;  %v977_v35 = vmax.f32 %v839_v7, 0.0 }
 0x1cf   : > { %v1489_v38 = vsel %vm2963_vm15, %v1488_v32, %v1487_v29  ;;  %v1520_v39 = vsel %vm2963_vm15, %v1519_v33, %v1518_v13  ;;  %vm1649_vm15 = vcmask 1042434   ;;  %v638_v11 = vpop.f32.mrf.mxu0 }
 0x1d0   : > { %v1429_v25 = vsel %vm1428_vm0, %v1427_v24, %v1425_v14 }
 0x1d1   : > { %1195 = vadd.xlane.f32.xlu1 %v960_v23  ;;  %1131 = vadd.xlane.f32.xlu2 %v928_v36  ;;  %v709_v23 = vpop.f32.mrf.mxu1  ;;  %v842_v36 = vpop.f32.mrf.mxu3 }
 0x1d2   : > { %1225 = vadd.xlane.f32.xlu0 %v975_v40  ;;  %v777_v24 = vpop.f32.mrf.mxu2 }
 0x1d4   : > { %v1046_v46 = vpop.xlane.xlu1 %1045  ;;  %v1078_v47 = vpop.xlane.xlu2 %1077 }
 0x1d5   : > { %v1459_v48 = vperm.slane %v1046_v46, %v2746_v18  ;;  %v1490_v49 = vperm.slane %v1078_v47, %v2746_v18  ;;  %v1110_v52 = vpop.xlane.xlu0 %1109  ;;  %v978_v46 = vmax.f32 %v842_v36, 0.0 }
 0x1d6   : > { %v1521_v54 = vperm.slane %v1110_v52, %v2746_v18 }
 0x1d7   : > { %v1460_v56 = vsel %vm1428_vm0, %v1459_v48, %v1458_v15  ;;  %v1491_v28 = vsel %vm1428_vm0, %v1490_v49, %v1489_v38  ;;  %v930_v15 = vmax.f32 %v638_v11, 0.0  ;;  %v641_v38 = vpop.f32.mrf.mxu0  ;;  %v947_v49 = vmax.f32 %v709_v23, 0.0 }
 0x1d8   : > { %v1648_v59 = vsel %vm1647_vm1, %v1460_v56, %v1429_v25  ;;  %v1522_v61 = vsel %vm1428_vm0, %v1521_v54, %v1520_v39  ;;  %v963_v25 = vmax.f32 %v777_v24, 0.0  ;;  %vm1659_vm1 = vcmask 1047559  }
 0x1d9   : > { %v1650_v29 = vsel %vm1649_vm15, %v1491_v28, %v1648_v59  ;;  %1227 = vadd.xlane.f32.xlu1 %v976_v51  ;;  %1197 = vadd.xlane.f32.xlu2 %v961_v50  ;;  %v712_v56 = vpop.f32.mrf.mxu1  ;;  %v845_v28 = vpop.f32.mrf.mxu3 }
 0x1da   : > { %v2760_v62 = vsel %vm1651_vm14, %v1522_v61, %v1650_v29  ;;  %1163 = vadd.xlane.f32.xlu0 %v944_v58  ;;  %v931_v61 = vmax.f32 %v641_v38, 0.0  ;;  %v780_v7 = vpop.f32.mrf.mxu2 }
 0x1dc   : > { %v1144_v2 = vpop.xlane.xlu2 %1143  ;;  %v1112_v3 = vpop.xlane.xlu1 %1111 }
 0x1dd   : > { %v1176_v6 = vpop.xlane.xlu0 %1175  ;;  %v1523_v16 = vperm.slane %v1112_v3, %v2581_v10  ;;  %v1554_v48 = vperm.slane %v1144_v2, %v2581_v10 }
 0x1de   : > { %v1585_v17 = vperm.slane %v1176_v6, %v2581_v10 }
 0x1df   : > { %v644_v57 = vpop.f32.mrf.mxu0 }
 0x1e0   : > { %v932_v3 = vmax.f32 %v644_v57, 0.0 }
 0x1e1   : > { %1165 = vadd.xlane.f32.xlu1 %v945_v4  ;;  %1167 = vadd.xlane.f32.xlu2 %v946_v5  ;;  %v715_v8 = vpop.f32.mrf.mxu1  ;;  %v848_v23 = vpop.f32.mrf.mxu3 }
 0x1e2   : > { %1133 = vadd.xlane.f32.xlu0 %v929_v9 }
 0x1e4   : > { %v1178_v13 = vpop.xlane.xlu1 %1177  ;;  %v1114_v14 = vpop.xlane.xlu2 %1113 }
 0x1e5   : > { %v1586_v19 = vperm.slane %v1178_v13, %v2584_v12  ;;  %v1524_v20 = vperm.slane %v1114_v14, %v2584_v12  ;;  %v1208_v22 = vpop.xlane.xlu0 %1207  ;;  %v948_v13 = vmax.f32 %v712_v56, 0.0 }
 0x1e6   : > { %v1616_v42 = vperm.slane %v1208_v22, %v2581_v10 }
 0x1e7   : > { %v1587_v32 = vsel %vm1372_vm2, %v1586_v19, %v1585_v17  ;;  %v1525_v33 = vsel %vm1372_vm2, %v1524_v20, %v1523_v16  ;;  %v964_v16 = vmax.f32 %v780_v7, 0.0 }
 0x1e9   : > { %1199 = vadd.xlane.f32.xlu2 %v962_v31  ;;  %1135 = vadd.xlane.f32.xlu1 %v930_v15 }
 0x1ea   : > { %1229 = vadd.xlane.f32.xlu0 %v977_v35 }
 0x1ec   : > { %v1210_v39 = vpop.xlane.xlu1 %1209  ;;  %v1180_v40 = vpop.xlane.xlu2 %1179 }
 0x1ed   : > { %v1617_v43 = vperm.slane %v1210_v39, %v2584_v12  ;;  %v1588_v44 = vperm.slane %v1180_v40, %v2604_v37  ;;  %v1146_v47 = vpop.xlane.xlu0 %1145 }
 0x1ee   : > { %v1555_v50 = vperm.slane %v1146_v47, %v2584_v12  ;;  %v979_v12 = vmax.f32 %v845_v28, 0.0 }
 0x1ef   : > { %v1618_v51 = vsel %vm1372_vm2, %v1617_v43, %v1616_v42  ;;  %v1589_v52 = vsel %vm1376_vm3, %v1588_v44, %v1587_v32  ;;  %v783_v32 = vpop.f32.mrf.mxu2 }
 0x1f0   : > { %v1556_v54 = vsel %vm1372_vm2, %v1555_v50, %v1554_v48  ;;  %v965_v39 = vmax.f32 %v783_v32, 0.0  ;;  %v851_v48 = vpop.f32.mrf.mxu3  ;;  %vm2968_vm2 = vcmask 917312  }
 0x1f1   : > { %1231 = vadd.xlane.f32.xlu2 %v978_v46  ;;  %1201 = vadd.xlane.f32.xlu1 %v963_v25  ;;  %v980_v46 = vmax.f32 %v848_v23, 0.0  ;;  %vm2974_vm15 = vmmov %vm2968_vm2 }
 0x1f2   : > { %1169 = vadd.xlane.f32.xlu0 %v947_v49 }
 0x1f4   : > { %v1148_v58 = vpop.xlane.xlu1 %1147  ;;  %v1212_v59 = vpop.xlane.xlu2 %1211 }
 0x1f5   : > { %v1557_v10 = vperm.slane %v1148_v58, %v2604_v37  ;;  %v1619_v29 = vperm.slane %v1212_v59, %v2604_v37  ;;  %v1116_v63 = vpop.xlane.xlu0 %1115 }
 0x1f6   : > { %v1526_v2 = vperm.slane %v1116_v63, %v2604_v37  ;;  %v949_v37 = vmax.f32 %v715_v8, 0.0 }
 0x1f7   : > { %v1558_v4 = vsel %vm1376_vm3, %v1557_v10, %v1556_v54  ;;  %v1620_v5 = vsel %vm1376_vm3, %v1619_v29, %v1618_v51  ;;  %v981_v54 = vmax.f32 %v851_v48, 0.0 }
 0x1f8   : > { %v1527_v6 = vsel %vm1376_vm3, %v1526_v2, %v1525_v33  ;;  %v647_v33 = vpop.f32.mrf.mxu0  ;;  %vm2969_vm3 = vmmov %vm2968_vm2 }
 0x1f9   : > { %1233 = vadd.xlane.f32.xlu1 %v979_v12  ;;  %1137 = vadd.xlane.f32.xlu2 %v931_v61  ;;  %v933_v25 = vmax.f32 %v647_v33, 0.0 }
 0x1fa   : > { %1139 = vadd.xlane.f32.xlu0 %v932_v3 }
 0x1fc   : > { %v1150_v9 = vpop.xlane.xlu2 %1149  ;;  %v1118_v11 = vpop.xlane.xlu1 %1117 }
 0x1fd   : > { %v1559_v14 = vperm.slane %v1150_v9, %v2614_v27  ;;  %v1528_v31 = vperm.slane %v1118_v11, %v2614_v27  ;;  %v1182_v15 = vpop.xlane.xlu0 %1181 }
 0x1fe   : > { %v1590_v17 = vperm.slane %v1182_v15, %v2614_v27 }
 0x1ff   : > { %v1560_v19 = vsel %vm1380_vm4, %v1559_v14, %v1558_v4  ;;  %v1529_v20 = vsel %vm1380_vm4, %v1528_v31, %v1527_v6 }
 0x200   : > { %v1591_v22 = vsel %vm1380_vm4, %v1590_v17, %v1589_v52 }
 0x201   : > { %1171 = vadd.xlane.f32.xlu1 %v948_v13  ;;  %1173 = vadd.xlane.f32.xlu2 %v949_v37 }
 0x202   : > { %1203 = vadd.xlane.f32.xlu0 %v964_v16 }
 0x204   : > { %v1184_v35 = vpop.xlane.xlu1 %1183  ;;  %v1120_v36 = vpop.xlane.xlu2 %1119 }
 0x205   : > { %v1592_v24 = vperm.slane %v1184_v35, %v2623_v1  ;;  %v1530_v38 = vperm.slane %v1120_v36, %v2623_v1  ;;  %v1214_v40 = vpop.xlane.xlu0 %1213 }
 0x206   : > { %v1621_v42 = vperm.slane %v1214_v40, %v2614_v27 }
 0x207   : > { %v1593_v43 = vsel %vm1384_vm5, %v1592_v24, %v1591_v22  ;;  %v1531_v44 = vsel %vm1384_vm5, %v1530_v38, %v1529_v20 }
 0x208   : > { %v1622_v47 = vsel %vm1380_vm4, %v1621_v42, %v1620_v5  ;;  %vm2970_vm4 = vcmask 982912  }
 0x209   : > { %1205 = vadd.xlane.f32.xlu2 %v965_v39  ;;  %1141 = vadd.xlane.f32.xlu1 %v933_v25  ;;  %vm2973_vm14 = vmmov %vm2970_vm4 }
 0x20a   : > { %1235 = vadd.xlane.f32.xlu0 %v980_v46 }
 0x20c   : > { %v1216_v49 = vpop.xlane.xlu1 %1215  ;;  %v1186_v50 = vpop.xlane.xlu2 %1185 }
 0x20d   : > { %v1623_v51 = vperm.slane %v1216_v49, %v2623_v1  ;;  %v1594_v52 = vperm.slane %v1186_v50, %v2638_v41  ;;  %v1152_v56 = vpop.xlane.xlu0 %1151 }
 0x20e   : > { %v1561_v27 = vperm.slane %v1152_v56, %v2623_v1 }
 0x20f   : > { %v1624_v28 = vsel %vm1384_vm5, %v1623_v51, %v1622_v47  ;;  %v1595_v57 = vsel %vm1388_vm6, %v1594_v52, %v1593_v43 }
 0x210   : > { %v1562_v58 = vsel %vm1384_vm5, %v1561_v27, %v1560_v19  ;;  %vm1653_vm5 = vcmask 1044484  }
 0x211   : > { %1237 = vadd.xlane.f32.xlu1 %v981_v54 }
 0x214   : > { %v1154_v59 = vpop.xlane.xlu1 %1153  ;;  %v1218_v61 = vpop.xlane.xlu2 %1217 }
 0x215   : > { %v1563_v10 = vperm.slane %v1154_v59, %v2638_v41  ;;  %v1625_v29 = vperm.slane %v1218_v61, %v2638_v41  ;;  %v1122_v12 = vpop.xlane.xlu0 %1121 }
 0x216   : > { %v1532_v63 = vperm.slane %v1122_v12, %v2638_v41 }
 0x217   : > { %v1564_v2 = vsel %vm1388_vm6, %v1563_v10, %v1562_v58  ;;  %v1626_v1 = vsel %vm1388_vm6, %v1625_v29, %v1624_v28 }
 0x218   : > { %v1533_v3 = vsel %vm1388_vm6, %v1532_v63, %v1531_v44  ;;  %vm2971_vm6 = vmmov %vm2970_vm4 }
 0x21c   : > { %v1156_v4 = vpop.xlane.xlu2 %1155  ;;  %v1124_v5 = vpop.xlane.xlu1 %1123 }
 0x21d   : > { %v1565_v6 = vperm.slane %v1156_v4, %v2647_v55  ;;  %v1534_v7 = vperm.slane %v1124_v5, %v2647_v55  ;;  %v1188_v8 = vpop.xlane.xlu0 %1187 }
 0x21e   : > { %v1596_v9 = vperm.slane %v1188_v8, %v2647_v55 }
 0x21f   : > { %v1566_v11 = vsel %vm1392_vm7, %v1565_v6, %v1564_v2  ;;  %v1535_v13 = vsel %vm1392_vm7, %v1534_v7, %v1533_v3 }
 0x220   : > { %v1597_v41 = vsel %vm1392_vm7, %v1596_v9, %v1595_v57 }
 0x224   : > { %v1190_v14 = vpop.xlane.xlu1 %1189  ;;  %v1126_v31 = vpop.xlane.xlu2 %1125 }
 0x225   : > { %v1598_v37 = vperm.slane %v1190_v14, %v2662_v21  ;;  %v1536_v15 = vperm.slane %v1126_v31, %v2662_v21  ;;  %v1220_v16 = vpop.xlane.xlu0 %1219 }
 0x226   : > { %v1627_v17 = vperm.slane %v1220_v16, %v2647_v55 }
 0x227   : > { %v1599_v19 = vsel %vm1396_vm8, %v1598_v37, %v1597_v41  ;;  %v1537_v20 = vsel %vm1396_vm8, %v1536_v15, %v1535_v13 }
 0x228   : > { %v1628_v22 = vsel %vm1392_vm7, %v1627_v17, %v1626_v1  ;;  %vm1655_vm7 = vcmask 1045509  }
 0x22c   : > { %v1222_v23 = vpop.xlane.xlu1 %1221  ;;  %v1192_v32 = vpop.xlane.xlu2 %1191 }
 0x22d   : > { %v1629_v33 = vperm.slane %v1222_v23, %v2662_v21  ;;  %v1600_v35 = vperm.slane %v1192_v32, %v2671_v45  ;;  %v1158_v36 = vpop.xlane.xlu0 %1157 }
 0x22e   : > { %v1567_v24 = vperm.slane %v1158_v36, %v2662_v21 }
 0x22f   : > { %v1630_v38 = vsel %vm1396_vm8, %v1629_v33, %v1628_v22  ;;  %v1601_v39 = vsel %vm1400_vm9, %v1600_v35, %v1599_v19 }
 0x230   : > { %v1568_v55 = vsel %vm1396_vm8, %v1567_v24, %v1566_v11  ;;  %vm2972_vm8 = vmmov %vm2968_vm2 }
 0x234   : > { %v1160_v40 = vpop.xlane.xlu1 %1159  ;;  %v1224_v25 = vpop.xlane.xlu2 %1223 }
 0x235   : > { %v1569_v42 = vperm.slane %v1160_v40, %v2671_v45  ;;  %v1631_v43 = vperm.slane %v1224_v25, %v2671_v45  ;;  %v1128_v44 = vpop.xlane.xlu0 %1127 }
 0x236   : > { %v1538_v4 = vperm.slane %v1128_v44, %v2671_v45 }
 0x237   : > { %v1570_v46 = vsel %vm1400_vm9, %v1569_v42, %v1568_v55  ;;  %v2828_v47 = vsel %vm1400_vm9, %v1631_v43, %v1630_v38 }
 0x238   : > { %v1539_v41 = vsel %vm1400_vm9, %v1538_v4, %v1537_v20  ;;  %vm1657_vm9 = vcmask 1046534  }
 0x23c   : > { %v1162_v48 = vpop.xlane.xlu2 %1161  ;;  %v1130_v21 = vpop.xlane.xlu1 %1129 }
 0x23d   : > { %v1194_v49 = vpop.xlane.xlu0 %1193  ;;  %v1571_v5 = vperm.slane %v1162_v48, %v2680_v60  ;;  %v1540_v6 = vperm.slane %v1130_v21, %v2680_v60 }
 0x23e   : > { %v1602_v14 = vperm.slane %v1194_v49, %v2680_v60 }
 0x23f   : > { %v1572_v45 = vsel %vm1404_vm10, %v1571_v5, %v1570_v46  ;;  %v1541_v15 = vsel %vm1404_vm10, %v1540_v6, %v1539_v41 }
 0x240   : > { %v1603_v36 = vsel %vm1404_vm10, %v1602_v14, %v1601_v39 }
 0x244   : > { %v1196_v50 = vpop.xlane.xlu1 %1195  ;;  %v1132_v51 = vpop.xlane.xlu2 %1131 }
 0x245   : > { %v2830_v52 = vpop.xlane.xlu0 %1225  ;;  %v1542_v8 = vperm.slane %v1132_v51, %v2695_v34  ;;  %v1604_v17 = vperm.slane %v1196_v50, %v2695_v34 }
 0x246   : > { %v1633_v55 = vperm.slane %v2830_v52, %v2680_v60 }
 0x247   : > { %v1543_v20 = vsel %vm1408_vm11, %v1542_v8, %v1541_v15  ;;  %v1605_v43 = vsel %vm1408_vm11, %v1604_v17, %v1603_v36 }
 0x248   : > { %v1634_v4 = vsel %vm1404_vm10, %v1633_v55, %v2828_v47  ;;  %vm2975_vm10 = vmmov %vm2970_vm4 }
 0x24c   : > { %v2832_v54 = vpop.xlane.xlu1 %1227  ;;  %v1198_v56 = vpop.xlane.xlu2 %1197 }
 0x24d   : > { %v1164_v27 = vpop.xlane.xlu0 %1163  ;;  %v1606_v32 = vperm.slane %v1198_v56, %v2704_v53 }
 0x24e   : > { %v1573_v7 = vperm.slane %v1164_v27, %v2695_v34 }
 0x24f   : > { %v1607_v48 = vsel %vm1412_vm12, %v1606_v32, %v1605_v43 }
 0x250   : > { %v1574_v19 = vsel %vm1408_vm11, %v1573_v7, %v1572_v45 }
 0x254   : > { %v1166_v28 = vpop.xlane.xlu1 %1165  ;;  %v1168_v57 = vpop.xlane.xlu2 %1167 }
 0x255   : > { %v1134_v58 = vpop.xlane.xlu0 %1133  ;;  %v1575_v9 = vperm.slane %v1166_v28, %v2704_v53  ;;  %v1577_v22 = vperm.slane %v1168_v57, %v2713_v30  ;;  %v1635_v28 = vperm.slane %v2832_v54, %v2695_v34 }
 0x256   : > { %v1544_v31 = vperm.slane %v1134_v58, %v2704_v53 }
 0x257   : > { %v1576_v33 = vsel %vm1412_vm12, %v1575_v9, %v1574_v19  ;;  %v1636_v6 = vsel %vm1408_vm11, %v1635_v28, %v1634_v4 }
 0x258   : > { %v1545_v24 = vsel %vm1412_vm12, %v1544_v31, %v1543_v20  ;;  %v1578_v44 = vsel %vm1416_vm13, %v1577_v22, %v1576_v33 }
 0x25c   : > { %v1200_v59 = vpop.xlane.xlu2 %1199  ;;  %v1136_v61 = vpop.xlane.xlu1 %1135 }
 0x25d   : > { %v2834_v10 = vpop.xlane.xlu0 %1229  ;;  %v1546_v16 = vperm.slane %v1136_v61, %v2713_v30  ;;  %v1608_v40 = vperm.slane %v1200_v59, %v2713_v30 }
 0x25e   : > { %v1637_v59 = vperm.slane %v2834_v10, %v2704_v53 }
 0x25f   : > { %v1547_v25 = vsel %vm1416_vm13, %v1546_v16, %v1545_v24  ;;  %v1609_v57 = vsel %vm1416_vm13, %v1608_v40, %v1607_v48 }
 0x264   : > { %v2836_v29 = vpop.xlane.xlu2 %1231  ;;  %v1202_v12 = vpop.xlane.xlu1 %1201 }
 0x265   : > { %v1170_v63 = vpop.xlane.xlu0 %1169  ;;  %v1610_v46 = vperm.slane %v1202_v12, %v2728_v26 }
 0x266   : > { %v1579_v35 = vperm.slane %v1170_v63, %v2728_v26 }
 0x267   : > { %v1611_v61 = vsel %vm2972_vm8, %v1610_v46, %v1609_v57 }
 0x268   : > { %v1580_v21 = vsel %vm2969_vm3, %v1579_v35, %v1578_v44 }
 0x26c   : > { %v2838_v2 = vpop.xlane.xlu1 %1233  ;;  %v1138_v1 = vpop.xlane.xlu2 %1137 }
 0x26d   : > { %v1140_v3 = vpop.xlane.xlu0 %1139  ;;  %v1548_v23 = vperm.slane %v1138_v1, %v2728_v26  ;;  %v1639_v1 = vperm.slane %v2836_v29, %v2713_v30  ;;  %v1641_v53 = vperm.slane %v2838_v2, %v2728_v26  ;;  %v1638_v29 = vsel %vm1412_vm12, %v1637_v59, %v1636_v6  ;;  %v982_v2 = vld [vmem:[#allocation2] sm:$0xff] }
 0x26e   : > { %v1550_v42 = vperm.slane %v1140_v3, %v2737_v0 }
 0x26f   : > { %v1549_v39 = vsel %vm2968_vm2, %v1548_v23, %v1547_v25  ;;  %v1640_v8 = vsel %vm1416_vm13, %v1639_v1, %v1638_v29 }
 0x270   : > { %v1551_v58 = vsel %vm2971_vm6, %v1550_v42, %v1549_v39 }
 0x274   : > { %v1172_v11 = vpop.xlane.xlu1 %1171  ;;  %v1174_v13 = vpop.xlane.xlu2 %1173 }
 0x275   : > { %v1204_v37 = vpop.xlane.xlu0 %1203  ;;  %v1581_v38 = vperm.slane %v1172_v11, %v2737_v0  ;;  %v1583_v60 = vperm.slane %v1174_v13, %v2746_v18 }
 0x276   : > { %v1612_v49 = vperm.slane %v1204_v37, %v2737_v0 }
 0x277   : > { %v1582_v52 = vsel %vm2970_vm4, %v1581_v38, %v1580_v21 }
 0x278   : > { %v1584_v3 = vsel %vm1428_vm0, %v1583_v60, %v1582_v52  ;;  %v1613_v34 = vsel %vm2973_vm14, %v1612_v49, %v1611_v61 }
 0x27c   : > { %v1206_v50 = vpop.xlane.xlu2 %1205  ;;  %v1142_v51 = vpop.xlane.xlu1 %1141 }
 0x27d   : > { %v1614_v56 = vperm.slane %v1206_v50, %v2746_v18  ;;  %v1552_v27 = vperm.slane %v1142_v51, %v2746_v18  ;;  %v1236_v63 = vpop.xlane.xlu0 %1235 }
 0x27e   : > { %v1643_v7 = vperm.slane %v1236_v63, %v2737_v0 }
 0x27f   : > { %v1553_v12 = vsel %vm1428_vm0, %v1552_v27, %v1551_v58  ;;  %v1615_v10 = vsel %vm1428_vm0, %v1614_v56, %v1613_v34 }
 0x280   : > { %v1654_v54 = vsel %vm1653_vm5, %v1553_v12, %v2760_v62  ;;  %v1642_v62 = vsel %vm2974_vm15, %v1641_v53, %v1640_v8 }
 0x281   : > { %v1656_v5 = vsel %vm1655_vm7, %v1584_v3, %v1654_v54  ;;  %v1644_v26 = vsel %vm2975_vm10, %v1643_v7, %v1642_v62 }
 0x282   : > { %v1658_v30 = vsel %vm1657_vm9, %v1615_v10, %v1656_v5 }
 0x284   : > { %v1238_v9 = vpop.xlane.xlu1 %1237 }
 0x285   : > { %v1645_v47 = vperm.slane %v1238_v9, %v2746_v18 }
 0x287   : > { %v1646_v11 = vsel %vm1428_vm0, %v1645_v47, %v1644_v26  ;;  %1667 = sbr.rel (%p1914_p4) target bundleno = 664 (0x298), region = 77 }
 0x288   : > { %v1660_v13 = vsel %vm1659_vm1, %v1646_v11, %v1658_v30 }
 0x289   : > { %v1662_v41 = vadd.f32 %v1660_v13, %v982_v2 }
 0x28b   : > { %1663 = vst [vmem:[#allocation2] sm:$0xff] %v1662_v41 }
 0x292   : > { %v1668_v0 = vld [vmem:[#allocation2] sm:$0xff] }
 0x293   : > { %v1669_v14 = vmul.f32 0.00390625, %v1668_v0 }
 0x295   : > { %v1670_v31 = vpack.c.bf16 %v1669_v14, %v1669_v14 }
 0x297   : > { %1671 = vst [vmem:[%s229_s7] sm:$0xf] %v1670_v31 }
 0x298 PF: > { %s1916_s12 = sshll.u32 %s2106_s15, 2  ;;  %s1685_s23 = sshll.u32 %s229_s7, 4  ;;  %s1686_s23 = int_to_ptr.vmem [resolvable:$true] %s1685_s23 }
 0x299   : > { %s1683_s26 = scalar_lea.hbm %s2962_s2, %s1916_s12  ;;  %s1673_s25 = scalar_lea.sflag [#allocation5], %s227_s28 }
 0x29a   : > { %s1687_s14 = sshll.u32 %s1683_s26, 4  ;;  %s2028_s19 = scalar_lea.hbm %s2962_s2, 8  ;;  %s1688_s14 = int_to_ptr.hbm [resolvable:$true] %s1687_s14 }
 0x29b   : > { %s2022_s29 = sshra.s32 %s1688_s14, 4  ;;  %s2023_s29 = int_to_ptr.hbm [resolvable:$true] %s2022_s29 }
 0x29c   : > { %s2024_s6 = scalar_lea.hbm %s2023_s29, 4  ;;  %p2029_p9 = scmp.lt.s32.totalorder %s2023_s29, %s2962_s2 }
 0x29d   : > { %p2025_p5 = scmp.ne.s32.totalorder %s2023_s29, %s2024_s6  ;;  %p2030_p10 = scmp.lt.s32.totalorder %s2028_s19, %s2024_s6 }
 0x29f   : > { %p2026_p6 = pnand %p2025_p5, %p2208_p7  ;;  %p2031_p11 = por %p2030_p10, %p2029_p9 }
 0x2a1   : > { %p2027_p8 = pneg %p2026_p6 }
 0x2a3   : > { %p2032_p13 = pnand %p2031_p11, %p2027_p8 }
 0x2a5   : > { %2035 = shalt.err (!%p2032_p13)
}
 0x2a6   : > { %1920 = dma.vmem_to_hbm [thread:$0]  (%p2208_p7), %s1686_s23, 64, %s1688_s14, %s1673_s25  }
 0x2a7 PF: > { %p1926_p0 = scmp.ge.s32.totalorder %s2118_s18, 2  ;;  %s1699_s28 = sand.u32 1, %s2082_s9  }
 0x2a8   : > { %s1700_s5 = scalar_lea.sflag [#allocation5], %s1699_s28 }
 0x2a9   : > { %p1923_p1 = pnand %p1926_p0, %p2216_p12 }
 0x2ab   : > { %p1924_p2 = pneg %p1923_p1 }
 0x2ad   : > { %2077 = dma.done.wait (%p1924_p2), %s1700_s5, 64  }
 0x2ae   : > { %2079 = vsyncadd (%p1924_p2), %s1700_s5, 4294967232  ;;  %s15_s18 = sadd.s32 1, %s2118_s18   ;;  %s2976_s9 = smov %s2086_s10 }
 0x2af   : > { %p12_p3 = scmp.ge.s32.totalorder %s15_s18, 6   ;;  %s2977_s10 = smov %s2090_s11 }
 0x2b0   : > { %s2978_s11 = smov %s2221_s3  ;;  %s2979_s12 = smov %s2098_s13 }
 0x2b1   : > { %s2980_s13 = smov %s2224_s4  ;;  %s2981_s14 = smov %s2110_s16 }
 0x2b2   : > { %s2982_s15 = smov %s2114_s17  ;;  %s2983_s16 = smov %s2986_s21 }
 0x2b3   : > { %s2984_s17 = smov %s2990_s22  ;;  %14 = sbr.rel (!%p12_p3) target bundleno = 6 (0x6), region = 117 }
 0x2b8   :  { %1706 = vsyncpa [#allocation5], 1 }
 0x2b9   :  { %1708 = vsyncpa [#allocation5 + $0x1], 1 }

</bundles_post_ra>
